<compile_context>
chip_gen: v6e
topology: v6e:2x2x1
jax: 0.10.0
libtpu: 0.0.40
codegen_flags: <defaults>
</compile_context>

<pallas_src>
import jax
import jax.numpy as jnp
from jax.experimental import pallas as pl
from jax.experimental.pallas import tpu as pltpu


def _add_relu_matmul_kernel(a_ref, b_ref, w_ref, o_ref):
    # Elementwise add + relu on the VPU; 1x1-conv-as-matmul on the MXU.
    # a_ref/b_ref: (Cin, TILE_M), w_ref: (Cout, Cin), o_ref: (Cout, TILE_M)
    x = jnp.maximum(a_ref[...] + b_ref[...], 0.0)
    o_ref[...] = jnp.dot(
        w_ref[...], x, preferred_element_type=jnp.float32
    ).astype(o_ref.dtype)


def add_relu_conv1x1(x217, x231, weight):
    """x217, x231: (N, Cin, H, W) float32 (NCHW, like PyTorch).
    weight: (Cout, Cin, 1, 1) float32 (PyTorch Conv2d weight layout).
    Returns (N, Cout, H, W) float32."""
    N, Cin, H, W = x217.shape
    Cout = weight.shape[0]
    HW = H * W

    LANE = 128
    # Lane-dense pixel tile: pad HW up to a multiple of 128; cap the tile at 512
    # so larger spatial sizes still pipeline and fit VMEM on every generation.
    tile_m = min(512, ((HW + LANE - 1) // LANE) * LANE)
    hw_pad = ((HW + tile_m - 1) // tile_m) * tile_m
    grid_m = hw_pad // tile_m

    # NCHW -> (N*Cin, HW): pure reshape, zero data movement.
    a = x217.reshape(N * Cin, HW)
    b = x231.reshape(N * Cin, HW)
    if hw_pad != HW:
        pad = ((0, 0), (0, hw_pad - HW))
        a = jnp.pad(a, pad)
        b = jnp.pad(b, pad)
    # (Cout, Cin, 1, 1) -> (Cout, Cin): pure reshape.
    w = weight.reshape(Cout, Cin)

    flops = 2 * N * Cout * Cin * hw_pad
    bytes_accessed = 4 * (2 * N * Cin * hw_pad + Cout * Cin + N * Cout * hw_pad)

    out = pl.pallas_call(
        _add_relu_matmul_kernel,
        out_shape=jax.ShapeDtypeStruct((N * Cout, hw_pad), x217.dtype),
        grid=(N, grid_m),
        in_specs=[
            # Batch n occupies rows [n*Cin, (n+1)*Cin) of the flattened input.
            pl.BlockSpec((Cin, tile_m), lambda n, m: (n, m)),
            pl.BlockSpec((Cin, tile_m), lambda n, m: (n, m)),
            # Weight stays resident across the whole grid.
            pl.BlockSpec((Cout, Cin), lambda n, m: (0, 0)),
        ],
        out_specs=pl.BlockSpec((Cout, tile_m), lambda n, m: (n, m)),
        compiler_params=pltpu.CompilerParams(
            dimension_semantics=("parallel", "parallel"),
        ),
        cost_estimate=pl.CostEstimate(
            flops=flops, transcendentals=0, bytes_accessed=bytes_accessed
        ),
    )(a, b, w)

    # Drop lane padding and reshape straight back to NCHW (no transpose).
    return out[:, :HW].reshape(N, Cout, H, W)


if __name__ == "__main__":
    # Shapes consistent with the module: batch 1, 336 channels, 14x14 spatial.
    N, C, H, W = 1, 336, 14, 14
    key = jax.random.PRNGKey(0)
    k1, k2, k3 = jax.random.split(key, 3)

    x217 = jax.random.normal(k1, (N, C, H, W), dtype=jnp.float32)
    x231 = jax.random.normal(k2, (N, C, H, W), dtype=jnp.float32)
    # Deterministic Conv2d(336, 336, 1x1, bias=False) weight (Kaiming-ish scale).
    weight = jax.random.normal(k3, (C, C, 1, 1), dtype=jnp.float32) * (1.0 / C) ** 0.5

    y = add_relu_conv1x1(x217, x231, weight)
    jax.block_until_ready(y)

    # Reference check in plain JAX (same math, outside the kernel).
    ref = jnp.einsum(
        "nchw,oc->nohw",
        jnp.maximum(x217 + x231, 0.0),
        weight.reshape(C, C),
    )
    assert y.shape == (N, C, H, W)
    assert jnp.allclose(y, ref, atol=1e-4, rtol=1e-4)

    print("KERNEL_OK")
</pallas_src>

<mosaic_0001>
module attributes {stable_mosaic.version = 11 : i64} {
  func.func @_add_relu_matmul_kernel(%arg0: i32, %arg1: i32, %arg2: memref<336x256xf32, #tpu.memory_space<vmem>>, %arg3: memref<336x256xf32, #tpu.memory_space<vmem>>, %arg4: memref<336x336xf32, #tpu.memory_space<vmem>>, %arg5: memref<336x256xf32, #tpu.memory_space<vmem>>) attributes {dimension_semantics = [#tpu.dimension_semantics<parallel>, #tpu.dimension_semantics<parallel>], iteration_bounds = array<i64: 1, 1>, scalar_prefetch = 0 : i64, scratch_operands = 0 : i64, tpu.core_type = #tpu.core_type<tc>, window_params = [{transform_indices = @transform_0, window_bounds = array<i64: 336, 256>}, {transform_indices = @transform_1, window_bounds = array<i64: 336, 256>}, {pipeline_mode = #tpu.pipeline_mode<synchronous>, transform_indices = @transform_2, window_bounds = array<i64: 336, 336>}, {transform_indices = @transform_3, window_bounds = array<i64: 336, 256>}]} {
    %c0 = arith.constant 0 : index
    %c0_0 = arith.constant 0 : index
    %0 = vector.load %arg2[%c0, %c0_0] : memref<336x256xf32, #tpu.memory_space<vmem>>, vector<336x256xf32>
    %c0_1 = arith.constant 0 : index
    %c0_2 = arith.constant 0 : index
    %1 = vector.load %arg3[%c0_1, %c0_2] : memref<336x256xf32, #tpu.memory_space<vmem>>, vector<336x256xf32>
    %2 = arith.addf %0, %1 : vector<336x256xf32>
    %cst = arith.constant 0.000000e+00 : f32
    %3 = vector.broadcast %cst : f32 to vector<336x256xf32>
    %4 = arith.maximumf %2, %3 : vector<336x256xf32>
    %c0_3 = arith.constant 0 : index
    %c0_4 = arith.constant 0 : index
    %5 = vector.load %arg4[%c0_3, %c0_4] : memref<336x336xf32, #tpu.memory_space<vmem>>, vector<336x336xf32>
    %cst_5 = arith.constant dense<0.000000e+00> : vector<336x256xf32>
    %6 = tpu.matmul %5, %4, %cst_5 {dimension_numbers = #tpu.dot_dimension_numbers<[1], [0], [0], [1], [0, 0, 1, 1], [], []>} : vector<336x336xf32>, vector<336x256xf32>, vector<336x256xf32> -> vector<336x256xf32>
    %c0_6 = arith.constant 0 : index
    %c0_7 = arith.constant 0 : index
    %7 = vector.load %arg5[%c0_6, %c0_7] : memref<336x256xf32, #tpu.memory_space<vmem>>, vector<336x256xf32>
    tpu.vector_store %arg5[%c0_6, %c0_7], %6 {strides = array<i32>} : memref<336x256xf32, #tpu.memory_space<vmem>>, vector<336x256xf32>,
    return
  }
  func.func @transform_0(%arg0: i32, %arg1: i32) -> (i32, i32) {
    %c0_i32 = arith.constant 0 : i32
    return %arg0, %arg1 : i32, i32
  }
  func.func @transform_1(%arg0: i32, %arg1: i32) -> (i32, i32) {
    %c0_i32 = arith.constant 0 : i32
    return %arg0, %arg1 : i32, i32
  }
  func.func @transform_2(%arg0: i32, %arg1: i32) -> (i32, i32) {
    %c0_i32 = arith.constant 0 : i32
    %c0_i32_0 = arith.constant 0 : i32
    %c0_i32_1 = arith.constant 0 : i32
    return %c0_i32, %c0_i32_0 : i32, i32
  }
  func.func @transform_3(%arg0: i32, %arg1: i32) -> (i32, i32) {
    %c0_i32 = arith.constant 0 : i32
    return %arg0, %arg1 : i32, i32
  }
}

</mosaic_0001>

<bundles_post_ra>
// kernel: tpu_custom_call.1
= control target key start
LH: loop header
LB: loop body
LE: loop exit
PB: predicated region body
PF: predicated region fallthrough
CT: control target
= control target key end

     0   :  { %8 = vsyncpa [#allocation3], 0  ;;  %s1715_s0 = inlined_call_operand.hbm [shape: f32[336,256], index: 0, kind: input, shape index: {}]   ;;  %s1716_s1 = inlined_call_operand.hbm [shape: f32[336,256], index: 1, kind: input, shape index: {}]   ;;  %s1717_s2 = inlined_call_operand.hbm [shape: f32[336,336], index: 2, kind: input, shape index: {}]   ;;  %s1718_s3 = inlined_call_operand.hbm [shape: f32[336,256], index: 3, kind: output, shape index: {}]  }
   0x1   :  { %9 = vsyncpa [#allocation6], 0 }
   0x2   :  { %10 = vsyncpa [#allocation4], 0  ;;  %s1518_s12 = smov [#allocation5]   ;;  %s1519_s14 = smov [#allocation2]  }
   0x3   :  { %s28_s13 = sshll.u32 %s1518_s12, 4  ;;  %s16_s15 = sshll.u32 %s1519_s14, 4  ;;  %s29_s13 = int_to_ptr.vmem [resolvable:$true] %s28_s13  ;;  %s17_s15 = int_to_ptr.vmem [resolvable:$true] %s16_s15 }
   0x4   :  { %s1440_s16 = scalar_lea.vmem %s29_s13, 10752  ;;  %p1445_p1 = scmp.lt.s32.totalorder %s29_s13, %s29_s13 }
   0x5   :  { %p1441_p0 = scmp.ne.s32.totalorder %s29_s13, %s1440_s16  ;;  %p1446_p2 = scmp.lt.s32.totalorder %s1440_s16, %s1440_s16 }
   0x7   :  { %p1447_p3 = por %p1446_p2, %p1445_p1 }
   0x9   :  { %p1448_p4 = pnand %p1447_p3, %p1441_p0 }
   0xb   :  { %1451 = shalt.err (!%p1448_p4)
}
   0xc   :  { %s1520_s17 = smov 256   ;;  %s1521_s18 = smov 16  }
   0xd   :  { %34 = dma.hbm_to_vmem [thread:$0]  %s1716_s1, 10752, %s29_s13, [#allocation6], %s1520_s17, %s1520_s17, %s1521_s18  }
   0xe   :  { %s1460_s21 = scalar_lea.vmem %s17_s15, 10752  ;;  %p1465_p6 = scmp.lt.s32.totalorder %s17_s15, %s17_s15 }
   0xf   :  { %p1461_p5 = scmp.ne.s32.totalorder %s17_s15, %s1460_s21  ;;  %p1466_p7 = scmp.lt.s32.totalorder %s1460_s21, %s1460_s21 }
  0x11   :  { %p1467_p8 = por %p1466_p7, %p1465_p6 }
  0x13   :  { %p1468_p9 = pnand %p1467_p8, %p1461_p5 }
  0x15   :  { %1471 = shalt.err (!%p1468_p9)
}
  0x16   :  { %22 = dma.hbm_to_vmem [thread:$0]  %s1715_s0, 10752, %s17_s15, [#allocation3], %s1520_s17, %s1520_s17, %s1521_s18  }
  0x17   :  { %s1522_s24 = smov [#allocation7]  }
  0x18   :  { %s40_s25 = sshll.u32 %s1522_s24, 4  ;;  %s41_s25 = int_to_ptr.vmem [resolvable:$true] %s40_s25 }
  0x19   :  { %s1480_s26 = scalar_lea.vmem %s41_s25, 16128  ;;  %p1485_p11 = scmp.lt.s32.totalorder %s41_s25, %s41_s25 }
  0x1a   :  { %p1481_p10 = scmp.ne.s32.totalorder %s41_s25, %s1480_s26  ;;  %p1486_p12 = scmp.lt.s32.totalorder %s1480_s26, %s1480_s26 }
  0x1c   :  { %p1487_p13 = por %p1486_p12, %p1485_p11 }
  0x1e   :  { %p1488_p0 = pnand %p1487_p13, %p1481_p10 }
  0x20   :  { %1491 = shalt.err (!%p1488_p0)
}
  0x21   :  { %s1523_s1 = smov 384   ;;  %s1524_s27 = smov 24  }
  0x22   :  { %46 = dma.hbm_to_vmem [thread:$0]  %s1717_s2, 16128, %s41_s25, [#allocation6], %s1523_s1, %s1523_s1, %s1524_s27  }
  0x23   :  { %1512 = dma.done.wait [#allocation3], 10752  }
  0x24   :  { %1513 = vsyncadd [#allocation3], 4294956544 }
  0x25   :  { %1514 = dma.done.wait [#allocation6], 26880  }
  0x26   :  { %1515 = vsyncadd [#allocation6], 4294940416  ;;  %v1525_v0 = vmov 0.0   ;;  %v87_v1 = vld [vmem:[#allocation2 + $0xf8] sm:$0xff]  ;;  %v86_v3 = vld [vmem:[#allocation2 + $0xf0] sm:$0xff]  ;;  %vm518_vm0 = vcmask 654336  }
  0x27   :  { %1026 = vmatprep.mubr.f32.mxu1 %v1525_v0  ;;  %v171_v2 = vld [vmem:[#allocation5 + $0xf8] sm:$0xff]  ;;  %v170_v5 = vld [vmem:[#allocation5 + $0xf0] sm:$0xff]  ;;  %v85_v6 = vld [vmem:[#allocation2 + $0xe8] sm:$0xff]  ;;  %s1526_s0 = smov [#allocation8]  }
  0x28   :  { %v255_v4 = vadd.f32 %v171_v2, %v87_v1  ;;  %v169_v7 = vld [vmem:[#allocation5 + $0xe8] sm:$0xff]  ;;  %v254_v8 = vadd.f32 %v170_v5, %v86_v3  ;;  %v84_v10 = vld [vmem:[#allocation2 + $0xe0] sm:$0xff]  ;;  %v83_v12 = vld [vmem:[#allocation2 + $0xd8] sm:$0xff]  ;;  %s1368_s2 = sshll.u32 %s1526_s0, 4  ;;  %s1369_s2 = int_to_ptr.vmem [resolvable:$true] %s1368_s2 }
  0x29   :  { %v253_v9 = vadd.f32 %v169_v7, %v85_v6  ;;  %v168_v11 = vld [vmem:[#allocation5 + $0xe0] sm:$0xff]  ;;  %v167_v15 = vld [vmem:[#allocation5 + $0xd8] sm:$0xff]  ;;  %v82_v16 = vld [vmem:[#allocation2 + $0xd0] sm:$0xff]  ;;  %s1492_s30 = scalar_lea.vmem %s1369_s2, 10752  ;;  %p1497_p2 = scmp.lt.s32.totalorder %s1369_s2, %s1369_s2 }
  0x2a   :  { %v339_v13 = vmax.f32 %v255_v4, 0.0  ;;  %v252_v14 = vadd.f32 %v168_v11, %v84_v10  ;;  %v166_v17 = vld [vmem:[#allocation5 + $0xd0] sm:$0xff]  ;;  %v338_v18 = vmax.f32 %v254_v8, 0.0  ;;  %v251_v20 = vadd.f32 %v167_v15, %v83_v12  ;;  %v81_v22 = vld [vmem:[#allocation2 + $0xc8] sm:$0xff]  ;;  %v80_v24 = vld [vmem:[#allocation2 + $0xc0] sm:$0xff]  ;;  %p1493_p1 = scmp.ne.s32.totalorder %s1369_s2, %s1492_s30  ;;  %p1498_p3 = scmp.lt.s32.totalorder %s1492_s30, %s1492_s30 }
  0x2b   :  { %v337_v19 = vmax.f32 %v253_v9, 0.0  ;;  %v250_v21 = vadd.f32 %v166_v17, %v82_v16  ;;  %v165_v23 = vld [vmem:[#allocation5 + $0xc8] sm:$0xff]  ;;  %v164_v27 = vld [vmem:[#allocation5 + $0xc0] sm:$0xff]  ;;  %v79_v28 = vld [vmem:[#allocation2 + $0xb8] sm:$0xff] }
  0x2c   :  { %645 = vmatprep.subr.mxu0 %v339_v13  ;;  %v336_v25 = vmax.f32 %v252_v14, 0.0  ;;  %v249_v26 = vadd.f32 %v165_v23, %v81_v22  ;;  %v163_v29 = vld [vmem:[#allocation5 + $0xb8] sm:$0xff]  ;;  %v335_v30 = vmax.f32 %v251_v20, 0.0  ;;  %v248_v32 = vadd.f32 %v164_v27, %v80_v24  ;;  %v78_v34 = vld [vmem:[#allocation2 + $0xb0] sm:$0xff]  ;;  %v77_v36 = vld [vmem:[#allocation2 + $0xa8] sm:$0xff]  ;;  %p1499_p4 = por %p1498_p3, %p1497_p2 }
  0x2d   :  { %646 = vmatpush1.msra.mxu0 %v338_v18  ;;  %v334_v31 = vmax.f32 %v250_v21, 0.0  ;;  %v247_v33 = vadd.f32 %v163_v29, %v79_v28  ;;  %v162_v35 = vld [vmem:[#allocation5 + $0xb0] sm:$0xff]  ;;  %v161_v39 = vld [vmem:[#allocation5 + $0xa8] sm:$0xff]  ;;  %v76_v40 = vld [vmem:[#allocation2 + $0xa0] sm:$0xff] }
  0x2e   :  { %647 = vmatprep.subr.mxu0 %v337_v19  ;;  %v333_v37 = vmax.f32 %v249_v26, 0.0  ;;  %v246_v38 = vadd.f32 %v162_v35, %v78_v34  ;;  %v160_v41 = vld [vmem:[#allocation5 + $0xa0] sm:$0xff]  ;;  %v332_v42 = vmax.f32 %v248_v32, 0.0  ;;  %v245_v43 = vadd.f32 %v161_v39, %v77_v36  ;;  %v75_v45 = vld [vmem:[#allocation2 + $0x98] sm:$0xff]  ;;  %v74_v47 = vld [vmem:[#allocation2 + $0x90] sm:$0xff]  ;;  %p1500_p5 = pnand %p1499_p4, %p1493_p1 }
  0x2f   :  { %648 = vmatpush1.msra.mxu0 %v336_v25  ;;  %v244_v44 = vadd.f32 %v160_v41, %v76_v40  ;;  %v159_v46 = vld [vmem:[#allocation5 + $0x98] sm:$0xff]  ;;  %v331_v48 = vmax.f32 %v247_v33, 0.0  ;;  %v158_v50 = vld [vmem:[#allocation5 + $0x90] sm:$0xff]  ;;  %v73_v51 = vld [vmem:[#allocation2 + $0x88] sm:$0xff] }
  0x30   :  { %649 = vmatprep.subr.mxu0 %v335_v30  ;;  %v243_v49 = vadd.f32 %v159_v46, %v75_v45  ;;  %v157_v52 = vld [vmem:[#allocation5 + $0x88] sm:$0xff]  ;;  %v330_v53 = vmax.f32 %v246_v38, 0.0  ;;  %v242_v54 = vadd.f32 %v158_v50, %v74_v47  ;;  %v72_v55 = vld [vmem:[#allocation2 + $0x80] sm:$0xff]  ;;  %v71_v57 = vld [vmem:[#allocation2 + $0x78] sm:$0xff]  ;;  %v329_v58 = vmax.f32 %v245_v43, 0.0 }
  0x31   :  { %650 = vmatpush1.msra.mxu0 %v334_v31  ;;  %v156_v56 = vld [vmem:[#allocation5 + $0x80] sm:$0xff]  ;;  %v241_v59 = vadd.f32 %v157_v52, %v73_v51  ;;  %v155_v60 = vld [vmem:[#allocation5 + $0x78] sm:$0xff]  ;;  %v70_v61 = vld [vmem:[#allocation2 + $0x70] sm:$0xff]  ;;  %v328_v63 = vmax.f32 %v244_v44, 0.0 }
  0x32   :  { %651 = vmatprep.subr.mxu0 %v333_v37  ;;  %v154_v62 = vld [vmem:[#allocation5 + $0x70] sm:$0xff]  ;;  %v240_v1 = vadd.f32 %v156_v56, %v72_v55  ;;  %v69_v2 = vld [vmem:[#allocation2 + $0x68] sm:$0xff]  ;;  %v327_v4 = vmax.f32 %v243_v49, 0.0  ;;  %v239_v5 = vadd.f32 %v155_v60, %v71_v57  ;;  %v68_v6 = vld [vmem:[#allocation2 + $0x60] sm:$0xff]  ;;  %v326_v8 = vmax.f32 %v242_v54, 0.0 }
  0x33   :  { %652 = vmatpush1.msra.mxu0 %v332_v42  ;;  %v153_v3 = vld [vmem:[#allocation5 + $0x68] sm:$0xff]  ;;  %v152_v7 = vld [vmem:[#allocation5 + $0x60] sm:$0xff]  ;;  %v238_v9 = vadd.f32 %v154_v62, %v70_v61  ;;  %v67_v10 = vld [vmem:[#allocation2 + $0x58] sm:$0xff]  ;;  %v325_v12 = vmax.f32 %v241_v59, 0.0 }
  0x34   :  { %653 = vmatprep.subr.mxu0 %v331_v48  ;;  %v151_v11 = vld [vmem:[#allocation5 + $0x58] sm:$0xff]  ;;  %v237_v13 = vadd.f32 %v153_v3, %v69_v2  ;;  %v66_v14 = vld [vmem:[#allocation2 + $0x50] sm:$0xff]  ;;  %v324_v16 = vmax.f32 %v240_v1, 0.0  ;;  %v236_v17 = vadd.f32 %v152_v7, %v68_v6  ;;  %v65_v18 = vld [vmem:[#allocation2 + $0x48] sm:$0xff]  ;;  %v323_v20 = vmax.f32 %v239_v5, 0.0 }
  0x35   :  { %654 = vmatpush1.msra.mxu0 %v330_v53  ;;  %v150_v15 = vld [vmem:[#allocation5 + $0x50] sm:$0xff]  ;;  %v149_v19 = vld [vmem:[#allocation5 + $0x48] sm:$0xff]  ;;  %v235_v21 = vadd.f32 %v151_v11, %v67_v10  ;;  %v64_v22 = vld [vmem:[#allocation2 + $0x40] sm:$0xff]  ;;  %v322_v24 = vmax.f32 %v238_v9, 0.0 }
  0x36   :  { %655 = vmatprep.subr.mxu0 %v329_v58  ;;  %v148_v23 = vld [vmem:[#allocation5 + $0x40] sm:$0xff]  ;;  %v234_v25 = vadd.f32 %v150_v15, %v66_v14  ;;  %v63_v26 = vld [vmem:[#allocation2 + $0x38] sm:$0xff]  ;;  %v321_v28 = vmax.f32 %v237_v13, 0.0  ;;  %v233_v29 = vadd.f32 %v149_v19, %v65_v18  ;;  %v62_v30 = vld [vmem:[#allocation2 + $0x30] sm:$0xff]  ;;  %v320_v32 = vmax.f32 %v236_v17, 0.0 }
  0x37   :  { %656 = vmatpush1.msra.mxu0 %v328_v63  ;;  %v147_v27 = vld [vmem:[#allocation5 + $0x38] sm:$0xff]  ;;  %v146_v31 = vld [vmem:[#allocation5 + $0x30] sm:$0xff]  ;;  %v232_v33 = vadd.f32 %v148_v23, %v64_v22  ;;  %v61_v34 = vld [vmem:[#allocation2 + $0x28] sm:$0xff]  ;;  %v319_v36 = vmax.f32 %v235_v21, 0.0 }
  0x38   :  { %657 = vmatprep.subr.mxu0 %v327_v4  ;;  %v145_v35 = vld [vmem:[#allocation5 + $0x28] sm:$0xff]  ;;  %v231_v37 = vadd.f32 %v147_v27, %v63_v26  ;;  %v60_v38 = vld [vmem:[#allocation2 + $0x20] sm:$0xff]  ;;  %v318_v40 = vmax.f32 %v234_v25, 0.0  ;;  %v230_v41 = vadd.f32 %v146_v31, %v62_v30  ;;  %v59_v42 = vld [vmem:[#allocation2 + $0x18] sm:$0xff]  ;;  %v317_v44 = vmax.f32 %v233_v29, 0.0 }
  0x39   :  { %658 = vmatpush1.msra.mxu0 %v326_v8  ;;  %v144_v39 = vld [vmem:[#allocation5 + $0x20] sm:$0xff]  ;;  %v143_v43 = vld [vmem:[#allocation5 + $0x18] sm:$0xff]  ;;  %v229_v45 = vadd.f32 %v145_v35, %v61_v34  ;;  %v58_v46 = vld [vmem:[#allocation2 + $0x10] sm:$0xff]  ;;  %v316_v48 = vmax.f32 %v232_v33, 0.0 }
  0x3a   :  { %659 = vmatprep.subr.mxu0 %v325_v12  ;;  %v142_v47 = vld [vmem:[#allocation5 + $0x10] sm:$0xff]  ;;  %v228_v49 = vadd.f32 %v144_v39, %v60_v38  ;;  %v57_v50 = vld [vmem:[#allocation2 + $0x8] sm:$0xff]  ;;  %v56_v52 = vld [vmem:[#allocation2] sm:$0xff]  ;;  %v315_v53 = vmax.f32 %v231_v37, 0.0  ;;  %v227_v54 = vadd.f32 %v143_v43, %v59_v42  ;;  %v314_v58 = vmax.f32 %v230_v41, 0.0 }
  0x3b   :  { %660 = vmatpush1.msra.mxu0 %v324_v16  ;;  %v141_v51 = vld [vmem:[#allocation5 + $0x8] sm:$0xff]  ;;  %v140_v55 = vld [vmem:[#allocation5] sm:$0xff]  ;;  %v119_v56 = vld [vmem:[#allocation2 + $0x1f8] sm:$0xff]  ;;  %v226_v59 = vadd.f32 %v142_v47, %v58_v46  ;;  %v313_v63 = vmax.f32 %v229_v45, 0.0 }
  0x3c   :  { %661 = vmatprep.subr.mxu0 %v323_v20  ;;  %v203_v57 = vld [vmem:[#allocation5 + $0x1f8] sm:$0xff]  ;;  %v118_v60 = vld [vmem:[#allocation2 + $0x1f0] sm:$0xff]  ;;  %v117_v62 = vld [vmem:[#allocation2 + $0x1e8] sm:$0xff]  ;;  %v225_v1 = vadd.f32 %v141_v51, %v57_v50  ;;  %v312_v5 = vmax.f32 %v228_v49, 0.0  ;;  %v224_v6 = vadd.f32 %v140_v55, %v56_v52  ;;  %v311_v10 = vmax.f32 %v227_v54, 0.0 }
  0x3d   :  { %662 = vmatpush1.msra.mxu0 %v322_v24  ;;  %v202_v61 = vld [vmem:[#allocation5 + $0x1f0] sm:$0xff]  ;;  %v201_v2 = vld [vmem:[#allocation5 + $0x1e8] sm:$0xff]  ;;  %v116_v3 = vld [vmem:[#allocation2 + $0x1e0] sm:$0xff]  ;;  %v1563_v11 = vadd.f32 %v203_v57, %v119_v56  ;;  %v310_v15 = vmax.f32 %v226_v59, 0.0 }
  0x3e   :  { %663 = vmatprep.subr.mxu0 %v321_v28  ;;  %v200_v4 = vld [vmem:[#allocation5 + $0x1e0] sm:$0xff]  ;;  %v115_v7 = vld [vmem:[#allocation2 + $0x1d8] sm:$0xff]  ;;  %v114_v12 = vld [vmem:[#allocation2 + $0x1d0] sm:$0xff]  ;;  %v1565_v16 = vadd.f32 %v202_v61, %v118_v60  ;;  %v309_v22 = vmax.f32 %v225_v1, 0.0  ;;  %v1567_v23 = vadd.f32 %v201_v2, %v117_v62  ;;  %v308_v29 = vmax.f32 %v224_v6, 0.0 }
  0x3f   :  { %664 = vmatpush1.msra.mxu0 %v320_v32  ;;  %v199_v8 = vld [vmem:[#allocation5 + $0x1d8] sm:$0xff]  ;;  %v198_v13 = vld [vmem:[#allocation5 + $0x1d0] sm:$0xff]  ;;  %v113_v17 = vld [vmem:[#allocation2 + $0x1c8] sm:$0xff]  ;;  %v1569_v30 = vadd.f32 %v200_v4, %v116_v3 }
  0x40   :  { %665 = vmatprep.subr.mxu0 %v319_v36  ;;  %v139_v9 = vld [vmem:[#allocation2 + $0x298] sm:$0xff]  ;;  %v197_v18 = vld [vmem:[#allocation5 + $0x1c8] sm:$0xff]  ;;  %v138_v20 = vld [vmem:[#allocation2 + $0x290] sm:$0xff]  ;;  %v371_v36 = vmax.f32 %v1563_v11, 0.0  ;;  %v1572_v37 = vadd.f32 %v199_v8, %v115_v7  ;;  %v370_v42 = vmax.f32 %v1565_v16, 0.0  ;;  %v1575_v43 = vadd.f32 %v198_v13, %v114_v12 }
  0x41   :  { %666 = vmatpush1.msra.mxu0 %v318_v40  ;;  %v223_v14 = vld [vmem:[#allocation5 + $0x298] sm:$0xff]  ;;  %v222_v21 = vld [vmem:[#allocation5 + $0x290] sm:$0xff]  ;;  %v112_v24 = vld [vmem:[#allocation2 + $0x1c0] sm:$0xff]  ;;  %v369_v50 = vmax.f32 %v1567_v23, 0.0  ;;  %v1578_v51 = vadd.f32 %v197_v18, %v113_v17  ;;  %v368_v57 = vmax.f32 %v1569_v30, 0.0 }
  0x42   :  { %667 = vmatprep.subr.mxu0 %v317_v44  ;;  %v307_v19 = vadd.f32 %v223_v14, %v139_v9  ;;  %v196_v25 = vld [vmem:[#allocation5 + $0x1c0] sm:$0xff]  ;;  %v306_v26 = vadd.f32 %v222_v21, %v138_v20  ;;  %v137_v27 = vld [vmem:[#allocation2 + $0x288] sm:$0xff]  ;;  %v111_v31 = vld [vmem:[#allocation2 + $0x1b8] sm:$0xff]  ;;  %v367_v1 = vmax.f32 %v1572_v37, 0.0  ;;  %v366_v7 = vmax.f32 %v1575_v43, 0.0 }
  0x43   :  { %668 = vmatpush1.msra.mxu0 %v316_v48  ;;  %v221_v28 = vld [vmem:[#allocation5 + $0x288] sm:$0xff]  ;;  %v195_v32 = vld [vmem:[#allocation5 + $0x1b8] sm:$0xff]  ;;  %v136_v35 = vld [vmem:[#allocation2 + $0x280] sm:$0xff] }
  0x44   :  { %669 = vmatprep.subr.mxu0 %v315_v53  ;;  %v391_v33 = vmax.f32 %v307_v19, 0.0  ;;  %v305_v34 = vadd.f32 %v221_v28, %v137_v27  ;;  %v110_v38 = vld [vmem:[#allocation2 + $0x1b0] sm:$0xff]  ;;  %v390_v40 = vmax.f32 %v306_v26, 0.0  ;;  %v220_v41 = vld [vmem:[#allocation5 + $0x280] sm:$0xff]  ;;  %v109_v44 = vld [vmem:[#allocation2 + $0x1a8] sm:$0xff]  ;;  %v1584_v2 = vadd.f32 %v195_v32, %v111_v31 }
  0x45   :  { %670 = vmatpush1.msra.mxu0 %v314_v58  ;;  %v194_v39 = vld [vmem:[#allocation5 + $0x1b0] sm:$0xff]  ;;  %v193_v45 = vld [vmem:[#allocation5 + $0x1a8] sm:$0xff]  ;;  %v304_v47 = vadd.f32 %v220_v41, %v136_v35  ;;  %v135_v48 = vld [vmem:[#allocation2 + $0x278] sm:$0xff]  ;;  %v1581_v58 = vadd.f32 %v196_v25, %v112_v24 }
  0x46   :  { %671 = vmatprep.subr.mxu0 %v313_v63  ;;  %974 = vmatprep.subr.mxu1 %v391_v33  ;;  %v389_v46 = vmax.f32 %v305_v34, 0.0  ;;  %v219_v49 = vld [vmem:[#allocation5 + $0x278] sm:$0xff]  ;;  %v108_v52 = vld [vmem:[#allocation2 + $0x1a0] sm:$0xff]  ;;  %v134_v55 = vld [vmem:[#allocation2 + $0x270] sm:$0xff]  ;;  %v1587_v8 = vadd.f32 %v194_v39, %v110_v38  ;;  %v1590_v16 = vadd.f32 %v193_v45, %v109_v44 }
  0x47   :  { %672 = vmatpush1.msra.mxu0 %v312_v5  ;;  %v192_v53 = vld [vmem:[#allocation5 + $0x1a0] sm:$0xff]  ;;  %975 = vmatpush1.msra.mxu1 %v390_v40  ;;  %v303_v54 = vadd.f32 %v219_v49, %v135_v48  ;;  %v218_v56 = vld [vmem:[#allocation5 + $0x270] sm:$0xff]  ;;  %v107_v59 = vld [vmem:[#allocation2 + $0x198] sm:$0xff]  ;;  %v388_v61 = vmax.f32 %v304_v47, 0.0 }
  0x48   :  { %673 = vmatprep.subr.mxu0 %v311_v10  ;;  %v191_v60 = vld [vmem:[#allocation5 + $0x198] sm:$0xff]  ;;  %976 = vmatprep.subr.mxu1 %v389_v46  ;;  %v302_v62 = vadd.f32 %v218_v56, %v134_v55  ;;  %v133_v63 = vld [vmem:[#allocation2 + $0x268] sm:$0xff]  ;;  %v106_v3 = vld [vmem:[#allocation2 + $0x190] sm:$0xff]  ;;  %v1593_v23 = vadd.f32 %v192_v53, %v108_v52  ;;  %v362_v35 = vmax.f32 %v1587_v8, 0.0  ;;  %v361_v43 = vmax.f32 %v1590_v16, 0.0 }
  0x49   :  { %674 = vmatpush1.msra.mxu0 %v310_v15  ;;  %v190_v4 = vld [vmem:[#allocation5 + $0x190] sm:$0xff]  ;;  %v387_v5 = vmax.f32 %v303_v54, 0.0  ;;  %v217_v6 = vld [vmem:[#allocation5 + $0x268] sm:$0xff]  ;;  %977 = vmatpush1.msra.mxu1 %v388_v61  ;;  %v132_v13 = vld [vmem:[#allocation2 + $0x260] sm:$0xff]  ;;  %v365_v15 = vmax.f32 %v1578_v51, 0.0  ;;  %v1596_v30 = vadd.f32 %v191_v60, %v107_v59 }
  0x4a   :  { %675 = vmatprep.subr.mxu0 %v309_v22  ;;  %v105_v9 = vld [vmem:[#allocation2 + $0x188] sm:$0xff]  ;;  %v386_v11 = vmax.f32 %v302_v62, 0.0  ;;  %v301_v12 = vadd.f32 %v217_v6, %v133_v63  ;;  %v216_v14 = vld [vmem:[#allocation5 + $0x260] sm:$0xff]  ;;  %v131_v20 = vld [vmem:[#allocation2 + $0x258] sm:$0xff]  ;;  %v364_v22 = vmax.f32 %v1581_v58, 0.0 }
  0x4b   :  { %676 = vmatpush1.msra.mxu0 %v308_v29  ;;  %v189_v10 = vld [vmem:[#allocation5 + $0x188] sm:$0xff]  ;;  %978 = vmatprep.subr.mxu1 %v387_v5  ;;  %v104_v17 = vld [vmem:[#allocation2 + $0x180] sm:$0xff]  ;;  %v300_v19 = vadd.f32 %v216_v14, %v132_v13  ;;  %v215_v21 = vld [vmem:[#allocation5 + $0x258] sm:$0xff]  ;;  %v363_v29 = vmax.f32 %v1584_v2, 0.0 }
  0x4c   :  { %677 = vmatprep.subr.mxu0 %v371_v36  ;;  %v188_v18 = vld [vmem:[#allocation5 + $0x180] sm:$0xff]  ;;  %979 = vmatpush1.msra.mxu1 %v386_v11  ;;  %v103_v24 = vld [vmem:[#allocation2 + $0x178] sm:$0xff]  ;;  %v385_v26 = vmax.f32 %v301_v12, 0.0  ;;  %v299_v27 = vadd.f32 %v215_v21, %v131_v20  ;;  %v130_v28 = vld [vmem:[#allocation2 + $0x250] sm:$0xff]  ;;  %v1599_v36 = vadd.f32 %v190_v4, %v106_v3  ;;  %v1602_v44 = vadd.f32 %v189_v10, %v105_v9 }
  0x4d   :  { %678 = vmatpush2.msra.mxu0 %v370_v42  ;;  %v187_v25 = vld [vmem:[#allocation5 + $0x178] sm:$0xff]  ;;  %v102_v31 = vld [vmem:[#allocation2 + $0x170] sm:$0xff]  ;;  %v384_v33 = vmax.f32 %v300_v19, 0.0  ;;  %v101_v37 = vld [vmem:[#allocation2 + $0x168] sm:$0xff]  ;;  %v1605_v51 = vadd.f32 %v188_v18, %v104_v17 }
  0x4e   :  { %679 = vmatprep.subr.mxu0 %v369_v50  ;;  %v186_v32 = vld [vmem:[#allocation5 + $0x170] sm:$0xff]  ;;  %980 = vmatprep.subr.mxu1 %v385_v26  ;;  %v185_v38 = vld [vmem:[#allocation5 + $0x168] sm:$0xff]  ;;  %v383_v39 = vmax.f32 %v299_v27, 0.0  ;;  %v100_v45 = vld [vmem:[#allocation2 + $0x160] sm:$0xff]  ;;  %v360_v50 = vmax.f32 %v1593_v23, 0.0  ;;  %v1608_v58 = vadd.f32 %v187_v25, %v103_v24  ;;  %v358_v63 = vmax.f32 %v1599_v36, 0.0 }
  0x4f   :  { %680 = vmatpush2.msra.mxu0 %v368_v57  ;;  %v214_v34 = vld [vmem:[#allocation5 + $0x250] sm:$0xff]  ;;  %v129_v41 = vld [vmem:[#allocation2 + $0x248] sm:$0xff]  ;;  %981 = vmatpush1.msra.mxu1 %v384_v33  ;;  %v184_v46 = vld [vmem:[#allocation5 + $0x160] sm:$0xff]  ;;  %v359_v57 = vmax.f32 %v1596_v30, 0.0  ;;  %v357_v8 = vmax.f32 %v1602_v44, 0.0  ;;  %v1614_v9 = vadd.f32 %v185_v38, %v101_v37  ;;  %v356_v14 = vmax.f32 %v1605_v51, 0.0 }
  0x50   :  { %681 = vmatprep.subr.mxu0 %v367_v1  ;;  %v298_v40 = vadd.f32 %v214_v34, %v130_v28  ;;  %v213_v42 = vld [vmem:[#allocation5 + $0x248] sm:$0xff]  ;;  %v128_v48 = vld [vmem:[#allocation2 + $0x240] sm:$0xff]  ;;  %982 = vmatprep.subr.mxu1 %v383_v39  ;;  %v99_v53 = vld [vmem:[#allocation2 + $0x158] sm:$0xff]  ;;  %v1611_v1 = vadd.f32 %v186_v32, %v102_v31  ;;  %v355_v21 = vmax.f32 %v1608_v58, 0.0 }
  0x51   :  { %682 = vmatpush2.msra.mxu0 %v366_v7  ;;  %v297_v47 = vadd.f32 %v213_v42, %v129_v41  ;;  %v212_v49 = vld [vmem:[#allocation5 + $0x240] sm:$0xff]  ;;  %v183_v54 = vld [vmem:[#allocation5 + $0x158] sm:$0xff]  ;;  %v98_v60 = vld [vmem:[#allocation2 + $0x150] sm:$0xff]  ;;  %v353_v34 = vmax.f32 %v1614_v9, 0.0 }
  0x52   :  { %683 = vmatprep.subr.mxu0 %v365_v15  ;;  %v382_v52 = vmax.f32 %v298_v40, 0.0  ;;  %v296_v55 = vadd.f32 %v212_v49, %v128_v48  ;;  %v127_v56 = vld [vmem:[#allocation2 + $0x238] sm:$0xff]  ;;  %v182_v61 = vld [vmem:[#allocation5 + $0x150] sm:$0xff]  ;;  %v97_v3 = vld [vmem:[#allocation2 + $0x148] sm:$0xff]  ;;  %v1617_v15 = vadd.f32 %v184_v46, %v100_v45  ;;  %v354_v27 = vmax.f32 %v1611_v1, 0.0 }
  0x53   :  { %684 = vmatpush2.msra.mxu0 %v364_v22  ;;  %v381_v59 = vmax.f32 %v297_v47, 0.0  ;;  %v211_v62 = vld [vmem:[#allocation5 + $0x238] sm:$0xff]  ;;  %v181_v4 = vld [vmem:[#allocation5 + $0x148] sm:$0xff]  ;;  %v126_v6 = vld [vmem:[#allocation2 + $0x230] sm:$0xff]  ;;  %v267_v22 = vadd.f32 %v183_v54, %v99_v53  ;;  %v1621_v28 = vadd.f32 %v182_v61, %v98_v60 }
  0x54   :  { %685 = vmatprep.subr.mxu0 %v363_v29  ;;  %983 = vmatpush1.msra.mxu1 %v382_v52  ;;  %v380_v2 = vmax.f32 %v296_v55, 0.0  ;;  %v295_v5 = vadd.f32 %v211_v62, %v127_v56  ;;  %v210_v7 = vld [vmem:[#allocation5 + $0x230] sm:$0xff]  ;;  %v96_v10 = vld [vmem:[#allocation2 + $0x140] sm:$0xff]  ;;  %v125_v12 = vld [vmem:[#allocation2 + $0x228] sm:$0xff]  ;;  %v352_v40 = vmax.f32 %v1617_v15, 0.0 }
  0x55   :  { %686 = vmatpush2.msra.mxu0 %v362_v35  ;;  %984 = vmatprep.subr.mxu1 %v381_v59  ;;  %v294_v11 = vadd.f32 %v210_v7, %v126_v6  ;;  %v209_v13 = vld [vmem:[#allocation5 + $0x228] sm:$0xff]  ;;  %v180_v17 = vld [vmem:[#allocation5 + $0x140] sm:$0xff]  ;;  %v95_v18 = vld [vmem:[#allocation2 + $0x138] sm:$0xff]  ;;  %v265_v35 = vadd.f32 %v181_v4, %v97_v3  ;;  %v351_v47 = vmax.f32 %v267_v22, 0.0  ;;  %v350_v53 = vmax.f32 %v1621_v28, 0.0 }
  0x56   :  { %687 = vmatprep.subr.mxu0 %v361_v43  ;;  %985 = vmatpush1.msra.mxu1 %v380_v2  ;;  %v379_v16 = vmax.f32 %v295_v5, 0.0  ;;  %v293_v19 = vadd.f32 %v209_v13, %v125_v12  ;;  %v124_v20 = vld [vmem:[#allocation2 + $0x220] sm:$0xff]  ;;  %v179_v24 = vld [vmem:[#allocation5 + $0x138] sm:$0xff]  ;;  %v94_v25 = vld [vmem:[#allocation2 + $0x130] sm:$0xff]  ;;  %v264_v41 = vadd.f32 %v180_v17, %v96_v10 }
  0x57   :  { %688 = vmatpush2.msra.mxu0 %v360_v50  ;;  %v378_v23 = vmax.f32 %v294_v11, 0.0  ;;  %v208_v26 = vld [vmem:[#allocation5 + $0x220] sm:$0xff]  ;;  %v178_v30 = vld [vmem:[#allocation5 + $0x130] sm:$0xff]  ;;  %v123_v32 = vld [vmem:[#allocation2 + $0x218] sm:$0xff]  ;;  %v263_v48 = vadd.f32 %v179_v24, %v95_v18  ;;  %v349_v60 = vmax.f32 %v265_v35, 0.0 }
  0x58   :  { %689 = vmatprep.subr.mxu0 %v359_v57  ;;  %986 = vmatprep.subr.mxu1 %v379_v16  ;;  %v377_v29 = vmax.f32 %v293_v19, 0.0  ;;  %v292_v31 = vadd.f32 %v208_v26, %v124_v20  ;;  %v207_v33 = vld [vmem:[#allocation5 + $0x218] sm:$0xff]  ;;  %v93_v36 = vld [vmem:[#allocation2 + $0x128] sm:$0xff]  ;;  %v122_v38 = vld [vmem:[#allocation2 + $0x210] sm:$0xff]  ;;  %v262_v54 = vadd.f32 %v178_v30, %v94_v25  ;;  %v348_v2 = vmax.f32 %v264_v41, 0.0 }
  0x59   :  { %690 = vmatpush2.msra.mxu0 %v358_v63  ;;  %987 = vmatpush1.msra.mxu1 %v378_v23  ;;  %v291_v37 = vadd.f32 %v207_v33, %v123_v32  ;;  %v206_v39 = vld [vmem:[#allocation5 + $0x210] sm:$0xff]  ;;  %v177_v43 = vld [vmem:[#allocation5 + $0x128] sm:$0xff]  ;;  %v92_v44 = vld [vmem:[#allocation2 + $0x120] sm:$0xff] }
  0x5a   :  { %691 = vmatprep.subr.mxu0 %v357_v8  ;;  %988 = vmatprep.subr.mxu1 %v377_v29  ;;  %v376_v42 = vmax.f32 %v292_v31, 0.0  ;;  %v290_v45 = vadd.f32 %v206_v39, %v122_v38  ;;  %v121_v46 = vld [vmem:[#allocation2 + $0x208] sm:$0xff]  ;;  %v176_v50 = vld [vmem:[#allocation5 + $0x120] sm:$0xff]  ;;  %v91_v51 = vld [vmem:[#allocation2 + $0x118] sm:$0xff]  ;;  %v261_v61 = vadd.f32 %v177_v43, %v93_v36  ;;  %v347_v8 = vmax.f32 %v263_v48, 0.0 }
  0x5b   :  { %692 = vmatpush2.msra.mxu0 %v356_v14  ;;  %v375_v49 = vmax.f32 %v291_v37, 0.0  ;;  %v205_v52 = vld [vmem:[#allocation5 + $0x208] sm:$0xff]  ;;  %v175_v56 = vld [vmem:[#allocation5 + $0x118] sm:$0xff]  ;;  %v120_v58 = vld [vmem:[#allocation2 + $0x200] sm:$0xff]  ;;  %v260_v3 = vadd.f32 %v176_v50, %v92_v44  ;;  %v346_v14 = vmax.f32 %v262_v54, 0.0 }
  0x5c   :  { %693 = vmatprep.subr.mxu0 %v355_v21  ;;  %989 = vmatpush1.msra.mxu1 %v376_v42  ;;  %v374_v55 = vmax.f32 %v290_v45, 0.0  ;;  %v289_v57 = vadd.f32 %v205_v52, %v121_v46  ;;  %v204_v59 = vld [vmem:[#allocation5 + $0x200] sm:$0xff]  ;;  %v90_v62 = vld [vmem:[#allocation2 + $0x110] sm:$0xff]  ;;  %v89_v5 = vld [vmem:[#allocation2 + $0x108] sm:$0xff]  ;;  %v259_v9 = vadd.f32 %v175_v56, %v91_v51  ;;  %v345_v16 = vmax.f32 %v261_v61, 0.0 }
  0x5d   :  { %694 = vmatpush2.msra.mxu0 %v354_v27  ;;  %990 = vmatprep.subr.mxu1 %v375_v49  ;;  %v174_v63 = vld [vmem:[#allocation5 + $0x110] sm:$0xff]  ;;  %v288_v1 = vadd.f32 %v204_v59, %v120_v58  ;;  %v173_v6 = vld [vmem:[#allocation5 + $0x108] sm:$0xff]  ;;  %v88_v12 = vld [vmem:[#allocation2 + $0x100] sm:$0xff]  ;;  %v344_v18 = vmax.f32 %v260_v3, 0.0 }
  0x5e   :  { %695 = vmatprep.subr.mxu0 %v353_v34  ;;  %991 = vmatpush1.msra.mxu1 %v374_v55  ;;  %v373_v4 = vmax.f32 %v289_v57, 0.0  ;;  %v393_v7 = vld [vmem:[#allocation7 + $0x8] sm:$0xff]  ;;  %v394_v11 = vld [vmem:[#allocation7 + $0x10] sm:$0xff]  ;;  %v172_v13 = vld [vmem:[#allocation5 + $0x100] sm:$0xff]  ;;  %v258_v15 = vadd.f32 %v174_v63, %v90_v62  ;;  %v257_v17 = vadd.f32 %v173_v6, %v89_v5  ;;  %v343_v20 = vmax.f32 %v259_v9, 0.0 }
  0x5f   :  { %696 = vmatpush2.msra.mxu0 %v352_v40  ;;  %v372_v10 = vmax.f32 %v288_v1, 0.0  ;;  %709 = vmatprep.mubr.f32.mxu0 %v393_v7  ;;  %v256_v19 = vadd.f32 %v172_v13, %v88_v12  ;;  %v397_v21 = vld [vmem:[#allocation7 + $0x28] sm:$0xff]  ;;  %v400_v25 = vld [vmem:[#allocation7 + $0x40] sm:$0xff]  ;;  %v403_v28 = vld [vmem:[#allocation7 + $0x58] sm:$0xff] }
  0x60   :  { %697 = vmatprep.subr.mxu0 %v351_v47  ;;  %992 = vmatprep.subr.mxu1 %v373_v4  ;;  %v342_v22 = vmax.f32 %v258_v15, 0.0  ;;  %v341_v23 = vmax.f32 %v257_v17, 0.0  ;;  %v392_v26 = vld [vmem:[#allocation7] sm:$0xff]  ;;  %v395_v29 = vld [vmem:[#allocation7 + $0x18] sm:$0xff]  ;;  %v406_v31 = vld [vmem:[#allocation7 + $0x70] sm:$0xff] }
  0x61   :  { %698 = vmatpush2.msra.mxu0 %v350_v53  ;;  %993 = vmatpush1.msra.mxu1 %v372_v10  ;;  %v340_v24 = vmax.f32 %v256_v19, 0.0  ;;  %v396_v27 = vld [vmem:[#allocation7 + $0x20] sm:$0xff]  ;;  %v399_v30 = vld [vmem:[#allocation7 + $0x38] sm:$0xff]  ;;  %v398_v32 = vld [vmem:[#allocation7 + $0x30] sm:$0xff] }
  0x62   :  { %699 = vmatprep.subr.mxu0 %v349_v60  ;;  %1381 = vmatmul.mubr.msk.f32.vlgmr.msra.gmra.mxu1 %vm518_vm0, %v394_v11  ;;  %v402_v33 = vld [vmem:[#allocation7 + $0x50] sm:$0xff]  ;;  %v409_v34 = vld [vmem:[#allocation7 + $0x88] sm:$0xff]  ;;  %v412_v37 = vld [vmem:[#allocation7 + $0xa0] sm:$0xff] }
  0x63   :  { %700 = vmatpush2.msra.mxu0 %v348_v2  ;;  %1032 = vmatprep.mubr.f32.mxu1 %v1525_v0  ;;  %v401_v35 = vld [vmem:[#allocation7 + $0x48] sm:$0xff]  ;;  %v404_v38 = vld [vmem:[#allocation7 + $0x60] sm:$0xff]  ;;  %v415_v40 = vld [vmem:[#allocation7 + $0xb8] sm:$0xff] }
  0x64   :  { %701 = vmatprep.subr.mxu0 %v347_v8  ;;  %v405_v36 = vld [vmem:[#allocation7 + $0x68] sm:$0xff]  ;;  %v408_v39 = vld [vmem:[#allocation7 + $0x80] sm:$0xff]  ;;  %v407_v41 = vld [vmem:[#allocation7 + $0x78] sm:$0xff] }
  0x65   :  { %702 = vmatpush2.msra.mxu0 %v346_v14  ;;  %v411_v42 = vld [vmem:[#allocation7 + $0x98] sm:$0xff]  ;;  %v418_v43 = vld [vmem:[#allocation7 + $0xd0] sm:$0xff]  ;;  %v421_v46 = vld [vmem:[#allocation7 + $0xe8] sm:$0xff] }
  0x66   :  { %703 = vmatprep.subr.mxu0 %v345_v16  ;;  %1382 = vmatmul.mubr.msk.f32.gmra.mxu1 %vm518_vm0, %v397_v21  ;;  %v410_v44 = vld [vmem:[#allocation7 + $0x90] sm:$0xff]  ;;  %v413_v47 = vld [vmem:[#allocation7 + $0xa8] sm:$0xff]  ;;  %v424_v49 = vld [vmem:[#allocation7 + $0x100] sm:$0xff] }
  0x67   :  { %704 = vmatpush2.msra.mxu0 %v344_v18  ;;  %1038 = vmatprep.mubr.f32.mxu1 %v1525_v0  ;;  %v414_v45 = vld [vmem:[#allocation7 + $0xb0] sm:$0xff]  ;;  %v417_v48 = vld [vmem:[#allocation7 + $0xc8] sm:$0xff]  ;;  %v416_v50 = vld [vmem:[#allocation7 + $0xc0] sm:$0xff] }
  0x68   :  { %705 = vmatprep.subr.mxu0 %v343_v20  ;;  %v420_v51 = vld [vmem:[#allocation7 + $0xe0] sm:$0xff]  ;;  %v427_v52 = vld [vmem:[#allocation7 + $0x118] sm:$0xff]  ;;  %v430_v55 = vld [vmem:[#allocation7 + $0x130] sm:$0xff] }
  0x69   :  { %706 = vmatpush2.msra.mxu0 %v342_v22  ;;  %v419_v53 = vld [vmem:[#allocation7 + $0xd8] sm:$0xff]  ;;  %v422_v56 = vld [vmem:[#allocation7 + $0xf0] sm:$0xff]  ;;  %v433_v58 = vld [vmem:[#allocation7 + $0x148] sm:$0xff] }
  0x6a   :  { %707 = vmatprep.subr.mxu0 %v341_v23  ;;  %1383 = vmatmul.mubr.msk.f32.gmra.mxu1 %vm518_vm0, %v400_v25  ;;  %v423_v54 = vld [vmem:[#allocation7 + $0xf8] sm:$0xff]  ;;  %v426_v57 = vld [vmem:[#allocation7 + $0x110] sm:$0xff]  ;;  %v425_v59 = vld [vmem:[#allocation7 + $0x108] sm:$0xff] }
  0x6b   :  { %708 = vmatpush2.msra.mxu0 %v340_v24  ;;  %1044 = vmatprep.mubr.f32.mxu1 %v1525_v0  ;;  %v429_v60 = vld [vmem:[#allocation7 + $0x128] sm:$0xff]  ;;  %v436_v61 = vld [vmem:[#allocation7 + $0x160] sm:$0xff]  ;;  %v439_v1 = vld [vmem:[#allocation7 + $0x178] sm:$0xff] }
  0x6c   :  { %710 = vmatmul.mubr.f32.vlgmr.msra.gmra.mxu0 %v392_v26  ;;  %v428_v62 = vld [vmem:[#allocation7 + $0x120] sm:$0xff]  ;;  %v431_v2 = vld [vmem:[#allocation7 + $0x138] sm:$0xff]  ;;  %v442_v4 = vld [vmem:[#allocation7 + $0x190] sm:$0xff] }
  0x6d   :  { %715 = vmatprep.mubr.f32.mxu0 %v396_v27  ;;  %v432_v63 = vld [vmem:[#allocation7 + $0x140] sm:$0xff]  ;;  %v435_v3 = vld [vmem:[#allocation7 + $0x158] sm:$0xff]  ;;  %v434_v5 = vld [vmem:[#allocation7 + $0x150] sm:$0xff] }
  0x6e   :  { %1384 = vmatmul.mubr.msk.f32.gmra.mxu1 %vm518_vm0, %v403_v28  ;;  %v438_v6 = vld [vmem:[#allocation7 + $0x170] sm:$0xff]  ;;  %v445_v7 = vld [vmem:[#allocation7 + $0x1a8] sm:$0xff]  ;;  %v448_v10 = vld [vmem:[#allocation7 + $0x1c0] sm:$0xff] }
  0x6f   :  { %1050 = vmatprep.mubr.f32.mxu1 %v1525_v0  ;;  %v437_v8 = vld [vmem:[#allocation7 + $0x168] sm:$0xff]  ;;  %v440_v11 = vld [vmem:[#allocation7 + $0x180] sm:$0xff]  ;;  %v451_v13 = vld [vmem:[#allocation7 + $0x1d8] sm:$0xff] }
  0x70   :  { %716 = vmatmul.mubr.f32.gmra.mxu0 %v395_v29  ;;  %v441_v9 = vld [vmem:[#allocation7 + $0x188] sm:$0xff]  ;;  %v444_v12 = vld [vmem:[#allocation7 + $0x1a0] sm:$0xff]  ;;  %v443_v14 = vld [vmem:[#allocation7 + $0x198] sm:$0xff] }
  0x71   :  { %721 = vmatprep.mubr.f32.mxu0 %v399_v30  ;;  %v447_v15 = vld [vmem:[#allocation7 + $0x1b8] sm:$0xff]  ;;  %v454_v16 = vld [vmem:[#allocation7 + $0x1f0] sm:$0xff]  ;;  %v457_v19 = vld [vmem:[#allocation7 + $0x208] sm:$0xff] }
  0x72   :  { %1385 = vmatmul.mubr.msk.f32.gmra.mxu1 %vm518_vm0, %v406_v31  ;;  %v446_v17 = vld [vmem:[#allocation7 + $0x1b0] sm:$0xff]  ;;  %v449_v20 = vld [vmem:[#allocation7 + $0x1c8] sm:$0xff]  ;;  %v460_v22 = vld [vmem:[#allocation7 + $0x220] sm:$0xff] }
  0x73   :  { %1056 = vmatprep.mubr.f32.mxu1 %v1525_v0  ;;  %v450_v18 = vld [vmem:[#allocation7 + $0x1d0] sm:$0xff]  ;;  %v453_v21 = vld [vmem:[#allocation7 + $0x1e8] sm:$0xff]  ;;  %v452_v23 = vld [vmem:[#allocation7 + $0x1e0] sm:$0xff] }
  0x74   :  { %722 = vmatmul.mubr.f32.gmra.mxu0 %v398_v32  ;;  %v456_v24 = vld [vmem:[#allocation7 + $0x200] sm:$0xff]  ;;  %v463_v25 = vld [vmem:[#allocation7 + $0x238] sm:$0xff]  ;;  %v466_v28 = vld [vmem:[#allocation7 + $0x250] sm:$0xff] }
  0x75   :  { %727 = vmatprep.mubr.f32.mxu0 %v402_v33  ;;  %v455_v26 = vld [vmem:[#allocation7 + $0x1f8] sm:$0xff]  ;;  %v458_v29 = vld [vmem:[#allocation7 + $0x210] sm:$0xff]  ;;  %v469_v31 = vld [vmem:[#allocation7 + $0x268] sm:$0xff] }
  0x76   :  { %1386 = vmatmul.mubr.msk.f32.gmra.mxu1 %vm518_vm0, %v409_v34  ;;  %v459_v27 = vld [vmem:[#allocation7 + $0x218] sm:$0xff]  ;;  %v462_v30 = vld [vmem:[#allocation7 + $0x230] sm:$0xff]  ;;  %v461_v32 = vld [vmem:[#allocation7 + $0x228] sm:$0xff] }
  0x77   :  { %1062 = vmatprep.mubr.f32.mxu1 %v1525_v0  ;;  %v465_v33 = vld [vmem:[#allocation7 + $0x248] sm:$0xff]  ;;  %v472_v34 = vld [vmem:[#allocation7 + $0x280] sm:$0xff] }
  0x78   :  { %728 = vmatmul.mubr.f32.gmra.mxu0 %v401_v35  ;;  %v464_v35 = vld [vmem:[#allocation7 + $0x240] sm:$0xff] }
  0x79   :  { %733 = vmatprep.mubr.f32.mxu0 %v405_v36  ;;  %v468_v36 = vld [vmem:[#allocation7 + $0x260] sm:$0xff] }
  0x7a   :  { %1387 = vmatmul.mubr.msk.f32.gmra.mxu1 %vm518_vm0, %v412_v37  ;;  %v475_v37 = vld [vmem:[#allocation7 + $0x298] sm:$0xff] }
  0x7b   :  { %1068 = vmatprep.mubr.f32.mxu1 %v1525_v0 }
  0x7c   :  { %734 = vmatmul.mubr.f32.gmra.mxu0 %v404_v38  ;;  %v467_v38 = vld [vmem:[#allocation7 + $0x258] sm:$0xff] }
  0x7d   :  { %739 = vmatprep.mubr.f32.mxu0 %v408_v39  ;;  %v471_v39 = vld [vmem:[#allocation7 + $0x278] sm:$0xff] }
  0x7e   :  { %1388 = vmatmul.mubr.msk.f32.gmra.mxu1 %vm518_vm0, %v415_v40  ;;  %v478_v40 = vld [vmem:[#allocation7 + $0x2b0] sm:$0xff] }
  0x7f   :  { %1074 = vmatprep.mubr.f32.mxu1 %v1525_v0 }
  0x80   :  { %740 = vmatmul.mubr.f32.gmra.mxu0 %v407_v41  ;;  %v470_v41 = vld [vmem:[#allocation7 + $0x270] sm:$0xff] }
  0x81   :  { %745 = vmatprep.mubr.f32.mxu0 %v411_v42  ;;  %v474_v42 = vld [vmem:[#allocation7 + $0x290] sm:$0xff] }
  0x82   :  { %1389 = vmatmul.mubr.msk.f32.gmra.mxu1 %vm518_vm0, %v418_v43  ;;  %v481_v43 = vld [vmem:[#allocation7 + $0x2c8] sm:$0xff] }
  0x83   :  { %1080 = vmatprep.mubr.f32.mxu1 %v1525_v0 }
  0x84   :  { %746 = vmatmul.mubr.f32.gmra.mxu0 %v410_v44  ;;  %v473_v44 = vld [vmem:[#allocation7 + $0x288] sm:$0xff] }
  0x85   :  { %751 = vmatprep.mubr.f32.mxu0 %v414_v45  ;;  %v477_v45 = vld [vmem:[#allocation7 + $0x2a8] sm:$0xff] }
  0x86   :  { %1390 = vmatmul.mubr.msk.f32.gmra.mxu1 %vm518_vm0, %v421_v46  ;;  %v484_v46 = vld [vmem:[#allocation7 + $0x2e0] sm:$0xff] }
  0x87   :  { %1086 = vmatprep.mubr.f32.mxu1 %v1525_v0 }
  0x88   :  { %752 = vmatmul.mubr.f32.gmra.mxu0 %v413_v47  ;;  %v476_v47 = vld [vmem:[#allocation7 + $0x2a0] sm:$0xff] }
  0x89   :  { %757 = vmatprep.mubr.f32.mxu0 %v417_v48  ;;  %v480_v48 = vld [vmem:[#allocation7 + $0x2c0] sm:$0xff] }
  0x8a   :  { %1391 = vmatmul.mubr.msk.f32.gmra.mxu1 %vm518_vm0, %v424_v49  ;;  %v487_v49 = vld [vmem:[#allocation7 + $0x2f8] sm:$0xff] }
  0x8b   :  { %1092 = vmatprep.mubr.f32.mxu1 %v1525_v0 }
  0x8c   :  { %758 = vmatmul.mubr.f32.gmra.mxu0 %v416_v50  ;;  %v479_v50 = vld [vmem:[#allocation7 + $0x2b8] sm:$0xff] }
  0x8d   :  { %763 = vmatprep.mubr.f32.mxu0 %v420_v51  ;;  %v483_v51 = vld [vmem:[#allocation7 + $0x2d8] sm:$0xff] }
  0x8e   :  { %1392 = vmatmul.mubr.msk.f32.gmra.mxu1 %vm518_vm0, %v427_v52  ;;  %v490_v52 = vld [vmem:[#allocation7 + $0x310] sm:$0xff] }
  0x8f   :  { %1098 = vmatprep.mubr.f32.mxu1 %v1525_v0 }
  0x90   :  { %764 = vmatmul.mubr.f32.gmra.mxu0 %v419_v53  ;;  %v482_v53 = vld [vmem:[#allocation7 + $0x2d0] sm:$0xff] }
  0x91   :  { %769 = vmatprep.mubr.f32.mxu0 %v423_v54  ;;  %v486_v54 = vld [vmem:[#allocation7 + $0x2f0] sm:$0xff] }
  0x92   :  { %1393 = vmatmul.mubr.msk.f32.gmra.mxu1 %vm518_vm0, %v430_v55  ;;  %v493_v55 = vld [vmem:[#allocation7 + $0x328] sm:$0xff] }
  0x93   :  { %1104 = vmatprep.mubr.f32.mxu1 %v1525_v0 }
  0x94   :  { %770 = vmatmul.mubr.f32.gmra.mxu0 %v422_v56  ;;  %v485_v56 = vld [vmem:[#allocation7 + $0x2e8] sm:$0xff] }
  0x95   :  { %775 = vmatprep.mubr.f32.mxu0 %v426_v57  ;;  %v489_v57 = vld [vmem:[#allocation7 + $0x308] sm:$0xff] }
  0x96   :  { %1394 = vmatmul.mubr.msk.f32.gmra.mxu1 %vm518_vm0, %v433_v58  ;;  %v496_v58 = vld [vmem:[#allocation7 + $0x340] sm:$0xff] }
  0x97   :  { %1110 = vmatprep.mubr.f32.mxu1 %v1525_v0 }
  0x98   :  { %776 = vmatmul.mubr.f32.gmra.mxu0 %v425_v59  ;;  %v488_v59 = vld [vmem:[#allocation7 + $0x300] sm:$0xff] }
  0x99   :  { %781 = vmatprep.mubr.f32.mxu0 %v429_v60  ;;  %v492_v60 = vld [vmem:[#allocation7 + $0x320] sm:$0xff] }
  0x9a   :  { %1395 = vmatmul.mubr.msk.f32.gmra.mxu1 %vm518_vm0, %v436_v61  ;;  %v499_v61 = vld [vmem:[#allocation7 + $0x358] sm:$0xff] }
  0x9b   :  { %1116 = vmatprep.mubr.f32.mxu1 %v1525_v0 }
  0x9c   :  { %782 = vmatmul.mubr.f32.gmra.mxu0 %v428_v62  ;;  %v491_v62 = vld [vmem:[#allocation7 + $0x318] sm:$0xff] }
  0x9d   :  { %787 = vmatprep.mubr.f32.mxu0 %v432_v63  ;;  %v495_v63 = vld [vmem:[#allocation7 + $0x338] sm:$0xff] }
  0x9e   :  { %1396 = vmatmul.mubr.msk.f32.gmra.mxu1 %vm518_vm0, %v439_v1  ;;  %v502_v1 = vld [vmem:[#allocation7 + $0x370] sm:$0xff] }
  0x9f   :  { %1122 = vmatprep.mubr.f32.mxu1 %v1525_v0 }
  0xa0   :  { %788 = vmatmul.mubr.f32.gmra.mxu0 %v431_v2  ;;  %v494_v2 = vld [vmem:[#allocation7 + $0x330] sm:$0xff] }
  0xa1   :  { %793 = vmatprep.mubr.f32.mxu0 %v435_v3  ;;  %v498_v3 = vld [vmem:[#allocation7 + $0x350] sm:$0xff] }
  0xa2   :  { %1397 = vmatmul.mubr.msk.f32.gmra.mxu1 %vm518_vm0, %v442_v4  ;;  %v505_v4 = vld [vmem:[#allocation7 + $0x388] sm:$0xff] }
  0xa3   :  { %1128 = vmatprep.mubr.f32.mxu1 %v1525_v0 }
  0xa4   :  { %794 = vmatmul.mubr.f32.gmra.mxu0 %v434_v5  ;;  %v497_v5 = vld [vmem:[#allocation7 + $0x348] sm:$0xff] }
  0xa5   :  { %799 = vmatprep.mubr.f32.mxu0 %v438_v6  ;;  %v501_v6 = vld [vmem:[#allocation7 + $0x368] sm:$0xff] }
  0xa6   :  { %1398 = vmatmul.mubr.msk.f32.gmra.mxu1 %vm518_vm0, %v445_v7  ;;  %v508_v7 = vld [vmem:[#allocation7 + $0x3a0] sm:$0xff] }
  0xa7   :  { %1134 = vmatprep.mubr.f32.mxu1 %v1525_v0 }
  0xa8   :  { %800 = vmatmul.mubr.f32.gmra.mxu0 %v437_v8  ;;  %v500_v8 = vld [vmem:[#allocation7 + $0x360] sm:$0xff] }
  0xa9   :  { %805 = vmatprep.mubr.f32.mxu0 %v441_v9  ;;  %v504_v9 = vld [vmem:[#allocation7 + $0x380] sm:$0xff] }
  0xaa   :  { %1399 = vmatmul.mubr.msk.f32.gmra.mxu1 %vm518_vm0, %v448_v10  ;;  %v511_v10 = vld [vmem:[#allocation7 + $0x3b8] sm:$0xff] }
  0xab   :  { %1140 = vmatprep.mubr.f32.mxu1 %v1525_v0 }
  0xac   :  { %806 = vmatmul.mubr.f32.gmra.mxu0 %v440_v11  ;;  %v503_v11 = vld [vmem:[#allocation7 + $0x378] sm:$0xff] }
  0xad   :  { %811 = vmatprep.mubr.f32.mxu0 %v444_v12  ;;  %v507_v12 = vld [vmem:[#allocation7 + $0x398] sm:$0xff] }
  0xae   :  { %1400 = vmatmul.mubr.msk.f32.gmra.mxu1 %vm518_vm0, %v451_v13  ;;  %v514_v13 = vld [vmem:[#allocation7 + $0x3d0] sm:$0xff] }
  0xaf   :  { %1146 = vmatprep.mubr.f32.mxu1 %v1525_v0 }
  0xb0   :  { %812 = vmatmul.mubr.f32.gmra.mxu0 %v443_v14  ;;  %v506_v14 = vld [vmem:[#allocation7 + $0x390] sm:$0xff] }
  0xb1   :  { %817 = vmatprep.mubr.f32.mxu0 %v447_v15  ;;  %v510_v15 = vld [vmem:[#allocation7 + $0x3b0] sm:$0xff] }
  0xb2   :  { %1401 = vmatmul.mubr.msk.f32.gmra.mxu1 %vm518_vm0, %v454_v16  ;;  %v517_v16 = vld [vmem:[#allocation7 + $0x3e8] sm:$0xff] }
  0xb3   :  { %1152 = vmatprep.mubr.f32.mxu1 %v1525_v0 }
  0xb4   :  { %818 = vmatmul.mubr.f32.gmra.mxu0 %v446_v17  ;;  %v509_v17 = vld [vmem:[#allocation7 + $0x3a8] sm:$0xff] }
  0xb5   :  { %823 = vmatprep.mubr.f32.mxu0 %v450_v18  ;;  %v513_v18 = vld [vmem:[#allocation7 + $0x3c8] sm:$0xff] }
  0xb6   :  { %1402 = vmatmul.mubr.msk.f32.gmra.mxu1 %vm518_vm0, %v457_v19  ;;  %v512_v19 = vld [vmem:[#allocation7 + $0x3c0] sm:$0xff] }
  0xb7   :  { %1158 = vmatprep.mubr.f32.mxu1 %v1525_v0 }
  0xb8   :  { %824 = vmatmul.mubr.f32.gmra.mxu0 %v449_v20  ;;  %v516_v20 = vld [vmem:[#allocation7 + $0x3e0] sm:$0xff] }
  0xb9   :  { %829 = vmatprep.mubr.f32.mxu0 %v453_v21  ;;  %v515_v21 = vld [vmem:[#allocation7 + $0x3d8] sm:$0xff] }
  0xba   :  { %1403 = vmatmul.mubr.msk.f32.gmra.mxu1 %vm518_vm0, %v460_v22 }
  0xbb   :  { %1164 = vmatprep.mubr.f32.mxu1 %v1525_v0 }
  0xbc   :  { %830 = vmatmul.mubr.f32.gmra.mxu0 %v452_v23 }
  0xbd   :  { %835 = vmatprep.mubr.f32.mxu0 %v456_v24 }
  0xbe   :  { %1404 = vmatmul.mubr.msk.f32.gmra.mxu1 %vm518_vm0, %v463_v25 }
  0xbf   :  { %1170 = vmatprep.mubr.f32.mxu1 %v1525_v0 }
  0xc0   :  { %836 = vmatmul.mubr.f32.gmra.mxu0 %v455_v26 }
  0xc1   :  { %841 = vmatprep.mubr.f32.mxu0 %v459_v27 }
  0xc2   :  { %1405 = vmatmul.mubr.msk.f32.gmra.mxu1 %vm518_vm0, %v466_v28 }
  0xc3   :  { %1176 = vmatprep.mubr.f32.mxu1 %v1525_v0 }
  0xc4   :  { %842 = vmatmul.mubr.f32.gmra.mxu0 %v458_v29 }
  0xc5   :  { %847 = vmatprep.mubr.f32.mxu0 %v462_v30 }
  0xc6   :  { %1406 = vmatmul.mubr.msk.f32.gmra.mxu1 %vm518_vm0, %v469_v31 }
  0xc7   :  { %1182 = vmatprep.mubr.f32.mxu1 %v1525_v0 }
  0xc8   :  { %848 = vmatmul.mubr.f32.gmra.mxu0 %v461_v32 }
  0xc9   :  { %853 = vmatprep.mubr.f32.mxu0 %v465_v33 }
  0xca   :  { %1407 = vmatmul.mubr.msk.f32.gmra.mxu1 %vm518_vm0, %v472_v34 }
  0xcb   :  { %1188 = vmatprep.mubr.f32.mxu1 %v1525_v0 }
  0xcc   :  { %854 = vmatmul.mubr.f32.gmra.mxu0 %v464_v35 }
  0xcd   :  { %859 = vmatprep.mubr.f32.mxu0 %v468_v36 }
  0xce   :  { %1408 = vmatmul.mubr.msk.f32.gmra.mxu1 %vm518_vm0, %v475_v37 }
  0xcf   :  { %1194 = vmatprep.mubr.f32.mxu1 %v1525_v0 }
  0xd0   :  { %860 = vmatmul.mubr.f32.gmra.mxu0 %v467_v38 }
  0xd1   :  { %865 = vmatprep.mubr.f32.mxu0 %v471_v39 }
  0xd2   :  { %1409 = vmatmul.mubr.msk.f32.gmra.mxu1 %vm518_vm0, %v478_v40 }
  0xd3   :  { %1200 = vmatprep.mubr.f32.mxu1 %v1525_v0 }
  0xd4   :  { %866 = vmatmul.mubr.f32.gmra.mxu0 %v470_v41 }
  0xd5   :  { %871 = vmatprep.mubr.f32.mxu0 %v474_v42 }
  0xd6   :  { %1410 = vmatmul.mubr.msk.f32.gmra.mxu1 %vm518_vm0, %v481_v43 }
  0xd7   :  { %1206 = vmatprep.mubr.f32.mxu1 %v1525_v0 }
  0xd8   :  { %872 = vmatmul.mubr.f32.gmra.mxu0 %v473_v44 }
  0xd9   :  { %877 = vmatprep.mubr.f32.mxu0 %v477_v45 }
  0xda   :  { %1411 = vmatmul.mubr.msk.f32.gmra.mxu1 %vm518_vm0, %v484_v46 }
  0xdb   :  { %1212 = vmatprep.mubr.f32.mxu1 %v1525_v0 }
  0xdc   :  { %878 = vmatmul.mubr.f32.gmra.mxu0 %v476_v47 }
  0xdd   :  { %883 = vmatprep.mubr.f32.mxu0 %v480_v48 }
  0xde   :  { %1412 = vmatmul.mubr.msk.f32.gmra.mxu1 %vm518_vm0, %v487_v49 }
  0xdf   :  { %1218 = vmatprep.mubr.f32.mxu1 %v1525_v0 }
  0xe0   :  { %884 = vmatmul.mubr.f32.gmra.mxu0 %v479_v50 }
  0xe1   :  { %889 = vmatprep.mubr.f32.mxu0 %v483_v51 }
  0xe2   :  { %1413 = vmatmul.mubr.msk.f32.gmra.mxu1 %vm518_vm0, %v490_v52 }
  0xe3   :  { %1224 = vmatprep.mubr.f32.mxu1 %v1525_v0 }
  0xe4   :  { %890 = vmatmul.mubr.f32.gmra.mxu0 %v482_v53 }
  0xe5   :  { %895 = vmatprep.mubr.f32.mxu0 %v486_v54 }
  0xe6   :  { %1414 = vmatmul.mubr.msk.f32.gmra.mxu1 %vm518_vm0, %v493_v55 }
  0xe7   :  { %1230 = vmatprep.mubr.f32.mxu1 %v1525_v0 }
  0xe8   :  { %896 = vmatmul.mubr.f32.gmra.mxu0 %v485_v56 }
  0xe9   :  { %901 = vmatprep.mubr.f32.mxu0 %v489_v57 }
  0xea   :  { %1415 = vmatmul.mubr.msk.f32.gmra.mxu1 %vm518_vm0, %v496_v58 }
  0xeb   :  { %1236 = vmatprep.mubr.f32.mxu1 %v1525_v0 }
  0xec   :  { %902 = vmatmul.mubr.f32.gmra.mxu0 %v488_v59 }
  0xed   :  { %907 = vmatprep.mubr.f32.mxu0 %v492_v60 }
  0xee   :  { %1416 = vmatmul.mubr.msk.f32.gmra.mxu1 %vm518_vm0, %v499_v61 }
  0xef   :  { %1242 = vmatprep.mubr.f32.mxu1 %v1525_v0 }
  0xf0   :  { %908 = vmatmul.mubr.f32.gmra.mxu0 %v491_v62 }
  0xf1   :  { %913 = vmatprep.mubr.f32.mxu0 %v495_v63 }
  0xf2   :  { %1417 = vmatmul.mubr.msk.f32.gmra.mxu1 %vm518_vm0, %v502_v1 }
  0xf3   :  { %1248 = vmatprep.mubr.f32.mxu1 %v1525_v0 }
  0xf4   :  { %914 = vmatmul.mubr.f32.gmra.mxu0 %v494_v2 }
  0xf5   :  { %919 = vmatprep.mubr.f32.mxu0 %v498_v3 }
  0xf6   :  { %1418 = vmatmul.mubr.msk.f32.gmra.mxu1 %vm518_vm0, %v505_v4 }
  0xf7   :  { %1254 = vmatprep.mubr.f32.mxu1 %v1525_v0 }
  0xf8   :  { %920 = vmatmul.mubr.f32.gmra.mxu0 %v497_v5 }
  0xf9   :  { %925 = vmatprep.mubr.f32.mxu0 %v501_v6 }
  0xfa   :  { %1419 = vmatmul.mubr.msk.f32.gmra.mxu1 %vm518_vm0, %v508_v7 }
  0xfb   :  { %1260 = vmatprep.mubr.f32.mxu1 %v1525_v0 }
  0xfc   :  { %926 = vmatmul.mubr.f32.gmra.mxu0 %v500_v8 }
  0xfd   :  { %931 = vmatprep.mubr.f32.mxu0 %v504_v9 }
  0xfe   :  { %1420 = vmatmul.mubr.msk.f32.gmra.mxu1 %vm518_vm0, %v511_v10 }
  0xff   :  { %1266 = vmatprep.mubr.f32.mxu1 %v1525_v0 }
 0x100   :  { %932 = vmatmul.mubr.f32.gmra.mxu0 %v503_v11 }
 0x101   :  { %937 = vmatprep.mubr.f32.mxu0 %v507_v12 }
 0x102   :  { %1421 = vmatmul.mubr.msk.f32.gmra.mxu1 %vm518_vm0, %v514_v13 }
 0x103   :  { %1272 = vmatprep.mubr.f32.mxu1 %v1525_v0 }
 0x104   :  { %938 = vmatmul.mubr.f32.gmra.mxu0 %v506_v14 }
 0x105   :  { %943 = vmatprep.mubr.f32.mxu0 %v510_v15 }
 0x106   :  { %1422 = vmatmul.mubr.msk.f32.gmra.mxu1 %vm518_vm0, %v517_v16 }
 0x108   :  { %944 = vmatmul.mubr.f32.gmra.mxu0 %v509_v17 }
 0x109   :  { %949 = vmatprep.mubr.f32.mxu0 %v513_v18 }
 0x10c   :  { %950 = vmatmul.mubr.f32.gmra.mxu0 %v512_v19 }
 0x10d   :  { %955 = vmatprep.mubr.f32.mxu0 %v516_v20 }
 0x110   :  { %956 = vmatmul.mubr.f32.gmra.mxu0 %v515_v21 }
 0x122   :  { %v1028_v22 = vpop.f32.mrf.mxu1 }
 0x124   :  { %v1030_v23 = vpop.f32.mrf.mxu1 }
 0x126   :  { %v1034_v24 = vpop.f32.mrf.mxu1 }
 0x128   :  { %v1036_v25 = vpop.f32.mrf.mxu1 }
 0x12a   :  { %v1040_v26 = vpop.f32.mrf.mxu1 }
 0x12c   :  { %v711_v0 = vpop.f32.mrf.mxu0  ;;  %v1042_v28 = vpop.f32.mrf.mxu1 }
 0x12d   :  { %v1029_v27 = vadd.f32 %v1028_v22, %v711_v0 }
 0x12e   :  { %v713_v29 = vpop.f32.mrf.mxu0  ;;  %v1046_v31 = vpop.f32.mrf.mxu1 }
 0x12f   :  { %1279 = vst [vmem:[#allocation8] sm:$0xff] %v1029_v27  ;;  %v1031_v30 = vadd.f32 %v1030_v23, %v713_v29 }
 0x130   :  { %v717_v32 = vpop.f32.mrf.mxu0  ;;  %v1048_v34 = vpop.f32.mrf.mxu1 }
 0x131   :  { %1280 = vst [vmem:[#allocation8 + $0x8] sm:$0xff] %v1031_v30  ;;  %v1035_v33 = vadd.f32 %v1034_v24, %v717_v32 }
 0x132   :  { %v719_v35 = vpop.f32.mrf.mxu0  ;;  %v1052_v37 = vpop.f32.mrf.mxu1 }
 0x133   :  { %1281 = vst [vmem:[#allocation8 + $0x10] sm:$0xff] %v1035_v33  ;;  %v1037_v36 = vadd.f32 %v1036_v25, %v719_v35 }
 0x134   :  { %v723_v38 = vpop.f32.mrf.mxu0  ;;  %v1054_v40 = vpop.f32.mrf.mxu1 }
 0x135   :  { %1282 = vst [vmem:[#allocation8 + $0x18] sm:$0xff] %v1037_v36  ;;  %v1041_v39 = vadd.f32 %v1040_v26, %v723_v38 }
 0x136   :  { %v725_v41 = vpop.f32.mrf.mxu0  ;;  %v1058_v43 = vpop.f32.mrf.mxu1 }
 0x137   :  { %1283 = vst [vmem:[#allocation8 + $0x20] sm:$0xff] %v1041_v39  ;;  %v1043_v42 = vadd.f32 %v1042_v28, %v725_v41 }
 0x138   :  { %v729_v44 = vpop.f32.mrf.mxu0  ;;  %v1060_v46 = vpop.f32.mrf.mxu1 }
 0x139   :  { %1284 = vst [vmem:[#allocation8 + $0x28] sm:$0xff] %v1043_v42  ;;  %v1047_v45 = vadd.f32 %v1046_v31, %v729_v44 }
 0x13a   :  { %v731_v47 = vpop.f32.mrf.mxu0  ;;  %v1064_v49 = vpop.f32.mrf.mxu1 }
 0x13b   :  { %1285 = vst [vmem:[#allocation8 + $0x30] sm:$0xff] %v1047_v45  ;;  %v1049_v48 = vadd.f32 %v1048_v34, %v731_v47 }
 0x13c   :  { %v735_v50 = vpop.f32.mrf.mxu0  ;;  %v1066_v52 = vpop.f32.mrf.mxu1 }
 0x13d   :  { %1286 = vst [vmem:[#allocation8 + $0x38] sm:$0xff] %v1049_v48  ;;  %v1053_v51 = vadd.f32 %v1052_v37, %v735_v50 }
 0x13e   :  { %v737_v53 = vpop.f32.mrf.mxu0  ;;  %v1070_v55 = vpop.f32.mrf.mxu1 }
 0x13f   :  { %1287 = vst [vmem:[#allocation8 + $0x40] sm:$0xff] %v1053_v51  ;;  %v1055_v54 = vadd.f32 %v1054_v40, %v737_v53 }
 0x140   :  { %v741_v56 = vpop.f32.mrf.mxu0  ;;  %v1072_v58 = vpop.f32.mrf.mxu1 }
 0x141   :  { %1288 = vst [vmem:[#allocation8 + $0x48] sm:$0xff] %v1055_v54  ;;  %v1059_v57 = vadd.f32 %v1058_v43, %v741_v56 }
 0x142   :  { %v743_v59 = vpop.f32.mrf.mxu0  ;;  %v1076_v61 = vpop.f32.mrf.mxu1 }
 0x143   :  { %1289 = vst [vmem:[#allocation8 + $0x50] sm:$0xff] %v1059_v57  ;;  %v1061_v60 = vadd.f32 %v1060_v46, %v743_v59 }
 0x144   :  { %v747_v62 = vpop.f32.mrf.mxu0  ;;  %v1078_v1 = vpop.f32.mrf.mxu1 }
 0x145   :  { %1290 = vst [vmem:[#allocation8 + $0x58] sm:$0xff] %v1061_v60  ;;  %v1065_v63 = vadd.f32 %v1064_v49, %v747_v62 }
 0x146   :  { %v749_v2 = vpop.f32.mrf.mxu0  ;;  %v1082_v4 = vpop.f32.mrf.mxu1 }
 0x147   :  { %1291 = vst [vmem:[#allocation8 + $0x60] sm:$0xff] %v1065_v63  ;;  %v1067_v3 = vadd.f32 %v1066_v52, %v749_v2 }
 0x148   :  { %v753_v5 = vpop.f32.mrf.mxu0  ;;  %v1084_v7 = vpop.f32.mrf.mxu1 }
 0x149   :  { %1292 = vst [vmem:[#allocation8 + $0x68] sm:$0xff] %v1067_v3  ;;  %v1071_v6 = vadd.f32 %v1070_v55, %v753_v5 }
 0x14a   :  { %v755_v8 = vpop.f32.mrf.mxu0  ;;  %v1088_v10 = vpop.f32.mrf.mxu1 }
 0x14b   :  { %1293 = vst [vmem:[#allocation8 + $0x70] sm:$0xff] %v1071_v6  ;;  %v1073_v9 = vadd.f32 %v1072_v58, %v755_v8 }
 0x14c   :  { %v759_v11 = vpop.f32.mrf.mxu0  ;;  %v1090_v13 = vpop.f32.mrf.mxu1 }
 0x14d   :  { %1294 = vst [vmem:[#allocation8 + $0x78] sm:$0xff] %v1073_v9  ;;  %v1077_v12 = vadd.f32 %v1076_v61, %v759_v11 }
 0x14e   :  { %v761_v14 = vpop.f32.mrf.mxu0  ;;  %v1094_v16 = vpop.f32.mrf.mxu1 }
 0x14f   :  { %1295 = vst [vmem:[#allocation8 + $0x80] sm:$0xff] %v1077_v12  ;;  %v1079_v15 = vadd.f32 %v1078_v1, %v761_v14 }
 0x150   :  { %v765_v17 = vpop.f32.mrf.mxu0  ;;  %v1096_v19 = vpop.f32.mrf.mxu1 }
 0x151   :  { %1296 = vst [vmem:[#allocation8 + $0x88] sm:$0xff] %v1079_v15  ;;  %v1083_v18 = vadd.f32 %v1082_v4, %v765_v17 }
 0x152   :  { %v767_v20 = vpop.f32.mrf.mxu0  ;;  %v1100_v22 = vpop.f32.mrf.mxu1 }
 0x153   :  { %1297 = vst [vmem:[#allocation8 + $0x90] sm:$0xff] %v1083_v18  ;;  %v1085_v21 = vadd.f32 %v1084_v7, %v767_v20 }
 0x154   :  { %v771_v23 = vpop.f32.mrf.mxu0  ;;  %v1102_v25 = vpop.f32.mrf.mxu1 }
 0x155   :  { %1298 = vst [vmem:[#allocation8 + $0x98] sm:$0xff] %v1085_v21  ;;  %v1089_v24 = vadd.f32 %v1088_v10, %v771_v23 }
 0x156   :  { %v773_v26 = vpop.f32.mrf.mxu0  ;;  %v1106_v27 = vpop.f32.mrf.mxu1 }
 0x157   :  { %1299 = vst [vmem:[#allocation8 + $0xa0] sm:$0xff] %v1089_v24  ;;  %v1091_v0 = vadd.f32 %v1090_v13, %v773_v26 }
 0x158   :  { %v777_v28 = vpop.f32.mrf.mxu0  ;;  %v1108_v30 = vpop.f32.mrf.mxu1 }
 0x159   :  { %1300 = vst [vmem:[#allocation8 + $0xa8] sm:$0xff] %v1091_v0  ;;  %v1095_v29 = vadd.f32 %v1094_v16, %v777_v28 }
 0x15a   :  { %v779_v31 = vpop.f32.mrf.mxu0  ;;  %v1112_v33 = vpop.f32.mrf.mxu1 }
 0x15b   :  { %1301 = vst [vmem:[#allocation8 + $0xb0] sm:$0xff] %v1095_v29  ;;  %v1097_v32 = vadd.f32 %v1096_v19, %v779_v31 }
 0x15c   :  { %v783_v34 = vpop.f32.mrf.mxu0  ;;  %v1114_v36 = vpop.f32.mrf.mxu1 }
 0x15d   :  { %1302 = vst [vmem:[#allocation8 + $0xb8] sm:$0xff] %v1097_v32  ;;  %v1101_v35 = vadd.f32 %v1100_v22, %v783_v34 }
 0x15e   :  { %v785_v37 = vpop.f32.mrf.mxu0  ;;  %v1118_v39 = vpop.f32.mrf.mxu1 }
 0x15f   :  { %1303 = vst [vmem:[#allocation8 + $0xc0] sm:$0xff] %v1101_v35  ;;  %v1103_v38 = vadd.f32 %v1102_v25, %v785_v37 }
 0x160   :  { %v789_v40 = vpop.f32.mrf.mxu0  ;;  %v1120_v42 = vpop.f32.mrf.mxu1 }
 0x161   :  { %1304 = vst [vmem:[#allocation8 + $0xc8] sm:$0xff] %v1103_v38  ;;  %v1107_v41 = vadd.f32 %v1106_v27, %v789_v40 }
 0x162   :  { %v791_v43 = vpop.f32.mrf.mxu0  ;;  %v1124_v45 = vpop.f32.mrf.mxu1 }
 0x163   :  { %1305 = vst [vmem:[#allocation8 + $0xd0] sm:$0xff] %v1107_v41  ;;  %v1109_v44 = vadd.f32 %v1108_v30, %v791_v43 }
 0x164   :  { %v795_v46 = vpop.f32.mrf.mxu0  ;;  %v1126_v48 = vpop.f32.mrf.mxu1 }
 0x165   :  { %1306 = vst [vmem:[#allocation8 + $0xd8] sm:$0xff] %v1109_v44  ;;  %v1113_v47 = vadd.f32 %v1112_v33, %v795_v46 }
 0x166   :  { %v797_v49 = vpop.f32.mrf.mxu0  ;;  %v1130_v51 = vpop.f32.mrf.mxu1 }
 0x167   :  { %1307 = vst [vmem:[#allocation8 + $0xe0] sm:$0xff] %v1113_v47  ;;  %v1115_v50 = vadd.f32 %v1114_v36, %v797_v49 }
 0x168   :  { %v801_v52 = vpop.f32.mrf.mxu0  ;;  %v1132_v54 = vpop.f32.mrf.mxu1 }
 0x169   :  { %1308 = vst [vmem:[#allocation8 + $0xe8] sm:$0xff] %v1115_v50  ;;  %v1119_v53 = vadd.f32 %v1118_v39, %v801_v52 }
 0x16a   :  { %v803_v55 = vpop.f32.mrf.mxu0  ;;  %v1136_v57 = vpop.f32.mrf.mxu1 }
 0x16b   :  { %1309 = vst [vmem:[#allocation8 + $0xf0] sm:$0xff] %v1119_v53  ;;  %v1121_v56 = vadd.f32 %v1120_v42, %v803_v55 }
 0x16c   :  { %v807_v58 = vpop.f32.mrf.mxu0  ;;  %v1138_v60 = vpop.f32.mrf.mxu1 }
 0x16d   :  { %1310 = vst [vmem:[#allocation8 + $0xf8] sm:$0xff] %v1121_v56  ;;  %v1125_v59 = vadd.f32 %v1124_v45, %v807_v58 }
 0x16e   :  { %v809_v61 = vpop.f32.mrf.mxu0  ;;  %v1142_v63 = vpop.f32.mrf.mxu1 }
 0x16f   :  { %1311 = vst [vmem:[#allocation8 + $0x100] sm:$0xff] %v1125_v59  ;;  %v1127_v62 = vadd.f32 %v1126_v48, %v809_v61 }
 0x170   :  { %v813_v1 = vpop.f32.mrf.mxu0  ;;  %v1144_v3 = vpop.f32.mrf.mxu1 }
 0x171   :  { %1312 = vst [vmem:[#allocation8 + $0x108] sm:$0xff] %v1127_v62  ;;  %v1131_v2 = vadd.f32 %v1130_v51, %v813_v1 }
 0x172   :  { %v815_v4 = vpop.f32.mrf.mxu0  ;;  %v1148_v6 = vpop.f32.mrf.mxu1 }
 0x173   :  { %1313 = vst [vmem:[#allocation8 + $0x110] sm:$0xff] %v1131_v2  ;;  %v1133_v5 = vadd.f32 %v1132_v54, %v815_v4 }
 0x174   :  { %v819_v7 = vpop.f32.mrf.mxu0  ;;  %v1150_v9 = vpop.f32.mrf.mxu1 }
 0x175   :  { %1314 = vst [vmem:[#allocation8 + $0x118] sm:$0xff] %v1133_v5  ;;  %v1137_v8 = vadd.f32 %v1136_v57, %v819_v7 }
 0x176   :  { %v821_v10 = vpop.f32.mrf.mxu0  ;;  %v1154_v12 = vpop.f32.mrf.mxu1 }
 0x177   :  { %1315 = vst [vmem:[#allocation8 + $0x120] sm:$0xff] %v1137_v8  ;;  %v1139_v11 = vadd.f32 %v1138_v60, %v821_v10 }
 0x178   :  { %v825_v13 = vpop.f32.mrf.mxu0  ;;  %v1156_v15 = vpop.f32.mrf.mxu1 }
 0x179   :  { %1316 = vst [vmem:[#allocation8 + $0x128] sm:$0xff] %v1139_v11  ;;  %v1143_v14 = vadd.f32 %v1142_v63, %v825_v13 }
 0x17a   :  { %v827_v16 = vpop.f32.mrf.mxu0  ;;  %v1160_v18 = vpop.f32.mrf.mxu1 }
 0x17b   :  { %1317 = vst [vmem:[#allocation8 + $0x130] sm:$0xff] %v1143_v14  ;;  %v1145_v17 = vadd.f32 %v1144_v3, %v827_v16 }
 0x17c   :  { %v831_v19 = vpop.f32.mrf.mxu0  ;;  %v1162_v21 = vpop.f32.mrf.mxu1 }
 0x17d   :  { %1318 = vst [vmem:[#allocation8 + $0x138] sm:$0xff] %v1145_v17  ;;  %v1149_v20 = vadd.f32 %v1148_v6, %v831_v19 }
 0x17e   :  { %v833_v22 = vpop.f32.mrf.mxu0  ;;  %v1166_v24 = vpop.f32.mrf.mxu1 }
 0x17f   :  { %1319 = vst [vmem:[#allocation8 + $0x140] sm:$0xff] %v1149_v20  ;;  %v1151_v23 = vadd.f32 %v1150_v9, %v833_v22 }
 0x180   :  { %v837_v25 = vpop.f32.mrf.mxu0  ;;  %v1168_v0 = vpop.f32.mrf.mxu1 }
 0x181   :  { %1320 = vst [vmem:[#allocation8 + $0x148] sm:$0xff] %v1151_v23  ;;  %v1155_v26 = vadd.f32 %v1154_v12, %v837_v25 }
 0x182   :  { %v839_v27 = vpop.f32.mrf.mxu0  ;;  %v1172_v29 = vpop.f32.mrf.mxu1 }
 0x183   :  { %1321 = vst [vmem:[#allocation8 + $0x150] sm:$0xff] %v1155_v26  ;;  %v1157_v28 = vadd.f32 %v1156_v15, %v839_v27 }
 0x184   :  { %v843_v30 = vpop.f32.mrf.mxu0  ;;  %v1174_v32 = vpop.f32.mrf.mxu1 }
 0x185   :  { %1322 = vst [vmem:[#allocation8 + $0x158] sm:$0xff] %v1157_v28  ;;  %v1161_v31 = vadd.f32 %v1160_v18, %v843_v30 }
 0x186   :  { %v845_v33 = vpop.f32.mrf.mxu0  ;;  %v1178_v35 = vpop.f32.mrf.mxu1 }
 0x187   :  { %1323 = vst [vmem:[#allocation8 + $0x160] sm:$0xff] %v1161_v31  ;;  %v1163_v34 = vadd.f32 %v1162_v21, %v845_v33 }
 0x188   :  { %v849_v36 = vpop.f32.mrf.mxu0  ;;  %v1180_v38 = vpop.f32.mrf.mxu1 }
 0x189   :  { %1324 = vst [vmem:[#allocation8 + $0x168] sm:$0xff] %v1163_v34  ;;  %v1167_v37 = vadd.f32 %v1166_v24, %v849_v36 }
 0x18a   :  { %v851_v39 = vpop.f32.mrf.mxu0  ;;  %v1184_v41 = vpop.f32.mrf.mxu1 }
 0x18b   :  { %1325 = vst [vmem:[#allocation8 + $0x170] sm:$0xff] %v1167_v37  ;;  %v1169_v40 = vadd.f32 %v1168_v0, %v851_v39 }
 0x18c   :  { %v855_v42 = vpop.f32.mrf.mxu0  ;;  %v1186_v44 = vpop.f32.mrf.mxu1 }
 0x18d   :  { %1326 = vst [vmem:[#allocation8 + $0x178] sm:$0xff] %v1169_v40  ;;  %v1173_v43 = vadd.f32 %v1172_v29, %v855_v42 }
 0x18e   :  { %v857_v45 = vpop.f32.mrf.mxu0  ;;  %v1190_v47 = vpop.f32.mrf.mxu1 }
 0x18f   :  { %1327 = vst [vmem:[#allocation8 + $0x180] sm:$0xff] %v1173_v43  ;;  %v1175_v46 = vadd.f32 %v1174_v32, %v857_v45 }
 0x190   :  { %v861_v48 = vpop.f32.mrf.mxu0  ;;  %v1192_v50 = vpop.f32.mrf.mxu1 }
 0x191   :  { %1328 = vst [vmem:[#allocation8 + $0x188] sm:$0xff] %v1175_v46  ;;  %v1179_v49 = vadd.f32 %v1178_v35, %v861_v48 }
 0x192   :  { %v863_v51 = vpop.f32.mrf.mxu0  ;;  %v1196_v53 = vpop.f32.mrf.mxu1 }
 0x193   :  { %1329 = vst [vmem:[#allocation8 + $0x190] sm:$0xff] %v1179_v49  ;;  %v1181_v52 = vadd.f32 %v1180_v38, %v863_v51 }
 0x194   :  { %v867_v54 = vpop.f32.mrf.mxu0  ;;  %v1198_v56 = vpop.f32.mrf.mxu1 }
 0x195   :  { %1330 = vst [vmem:[#allocation8 + $0x198] sm:$0xff] %v1181_v52  ;;  %v1185_v55 = vadd.f32 %v1184_v41, %v867_v54 }
 0x196   :  { %v869_v57 = vpop.f32.mrf.mxu0  ;;  %v1202_v59 = vpop.f32.mrf.mxu1 }
 0x197   :  { %1331 = vst [vmem:[#allocation8 + $0x1a0] sm:$0xff] %v1185_v55  ;;  %v1187_v58 = vadd.f32 %v1186_v44, %v869_v57 }
 0x198   :  { %v873_v60 = vpop.f32.mrf.mxu0  ;;  %v1204_v62 = vpop.f32.mrf.mxu1 }
 0x199   :  { %1332 = vst [vmem:[#allocation8 + $0x1a8] sm:$0xff] %v1187_v58  ;;  %v1191_v61 = vadd.f32 %v1190_v47, %v873_v60 }
 0x19a   :  { %v875_v63 = vpop.f32.mrf.mxu0  ;;  %v1208_v2 = vpop.f32.mrf.mxu1 }
 0x19b   :  { %1333 = vst [vmem:[#allocation8 + $0x1b0] sm:$0xff] %v1191_v61  ;;  %v1193_v1 = vadd.f32 %v1192_v50, %v875_v63 }
 0x19c   :  { %v879_v3 = vpop.f32.mrf.mxu0  ;;  %v1210_v5 = vpop.f32.mrf.mxu1 }
 0x19d   :  { %1334 = vst [vmem:[#allocation8 + $0x1b8] sm:$0xff] %v1193_v1  ;;  %v1197_v4 = vadd.f32 %v1196_v53, %v879_v3 }
 0x19e   :  { %v881_v6 = vpop.f32.mrf.mxu0  ;;  %v1214_v8 = vpop.f32.mrf.mxu1 }
 0x19f   :  { %1335 = vst [vmem:[#allocation8 + $0x1c0] sm:$0xff] %v1197_v4  ;;  %v1199_v7 = vadd.f32 %v1198_v56, %v881_v6 }
 0x1a0   :  { %v885_v9 = vpop.f32.mrf.mxu0  ;;  %v1216_v11 = vpop.f32.mrf.mxu1 }
 0x1a1   :  { %1336 = vst [vmem:[#allocation8 + $0x1c8] sm:$0xff] %v1199_v7  ;;  %v1203_v10 = vadd.f32 %v1202_v59, %v885_v9 }
 0x1a2   :  { %v887_v12 = vpop.f32.mrf.mxu0  ;;  %v1220_v14 = vpop.f32.mrf.mxu1 }
 0x1a3   :  { %1337 = vst [vmem:[#allocation8 + $0x1d0] sm:$0xff] %v1203_v10  ;;  %v1205_v13 = vadd.f32 %v1204_v62, %v887_v12 }
 0x1a4   :  { %v891_v15 = vpop.f32.mrf.mxu0  ;;  %v1222_v17 = vpop.f32.mrf.mxu1 }
 0x1a5   :  { %1338 = vst [vmem:[#allocation8 + $0x1d8] sm:$0xff] %v1205_v13  ;;  %v1209_v16 = vadd.f32 %v1208_v2, %v891_v15 }
 0x1a6   :  { %v893_v18 = vpop.f32.mrf.mxu0  ;;  %v1226_v20 = vpop.f32.mrf.mxu1 }
 0x1a7   :  { %1339 = vst [vmem:[#allocation8 + $0x1e0] sm:$0xff] %v1209_v16  ;;  %v1211_v19 = vadd.f32 %v1210_v5, %v893_v18 }
 0x1a8   :  { %v897_v21 = vpop.f32.mrf.mxu0  ;;  %v1228_v23 = vpop.f32.mrf.mxu1 }
 0x1a9   :  { %1340 = vst [vmem:[#allocation8 + $0x1e8] sm:$0xff] %v1211_v19  ;;  %v1215_v22 = vadd.f32 %v1214_v8, %v897_v21 }
 0x1aa   :  { %v899_v24 = vpop.f32.mrf.mxu0  ;;  %v1232_v26 = vpop.f32.mrf.mxu1 }
 0x1ab   :  { %1341 = vst [vmem:[#allocation8 + $0x1f0] sm:$0xff] %v1215_v22  ;;  %v1217_v25 = vadd.f32 %v1216_v11, %v899_v24 }
 0x1ac   :  { %v903_v0 = vpop.f32.mrf.mxu0  ;;  %v1234_v28 = vpop.f32.mrf.mxu1 }
 0x1ad   :  { %1342 = vst [vmem:[#allocation8 + $0x1f8] sm:$0xff] %v1217_v25  ;;  %v1221_v27 = vadd.f32 %v1220_v14, %v903_v0 }
 0x1ae   :  { %v905_v29 = vpop.f32.mrf.mxu0  ;;  %v1238_v31 = vpop.f32.mrf.mxu1 }
 0x1af   :  { %1343 = vst [vmem:[#allocation8 + $0x200] sm:$0xff] %v1221_v27  ;;  %v1223_v30 = vadd.f32 %v1222_v17, %v905_v29 }
 0x1b0   :  { %v909_v32 = vpop.f32.mrf.mxu0  ;;  %v1240_v34 = vpop.f32.mrf.mxu1 }
 0x1b1   :  { %1344 = vst [vmem:[#allocation8 + $0x208] sm:$0xff] %v1223_v30  ;;  %v1227_v33 = vadd.f32 %v1226_v20, %v909_v32 }
 0x1b2   :  { %v911_v35 = vpop.f32.mrf.mxu0  ;;  %v1244_v37 = vpop.f32.mrf.mxu1 }
 0x1b3   :  { %1345 = vst [vmem:[#allocation8 + $0x210] sm:$0xff] %v1227_v33  ;;  %v1229_v36 = vadd.f32 %v1228_v23, %v911_v35 }
 0x1b4   :  { %v915_v38 = vpop.f32.mrf.mxu0  ;;  %v1246_v40 = vpop.f32.mrf.mxu1 }
 0x1b5   :  { %1346 = vst [vmem:[#allocation8 + $0x218] sm:$0xff] %v1229_v36  ;;  %v1233_v39 = vadd.f32 %v1232_v26, %v915_v38 }
 0x1b6   :  { %v917_v41 = vpop.f32.mrf.mxu0  ;;  %v1250_v43 = vpop.f32.mrf.mxu1 }
 0x1b7   :  { %1347 = vst [vmem:[#allocation8 + $0x220] sm:$0xff] %v1233_v39  ;;  %v1235_v42 = vadd.f32 %v1234_v28, %v917_v41 }
 0x1b8   :  { %v921_v44 = vpop.f32.mrf.mxu0  ;;  %v1252_v46 = vpop.f32.mrf.mxu1 }
 0x1b9   :  { %1348 = vst [vmem:[#allocation8 + $0x228] sm:$0xff] %v1235_v42  ;;  %v1239_v45 = vadd.f32 %v1238_v31, %v921_v44 }
 0x1ba   :  { %v923_v47 = vpop.f32.mrf.mxu0  ;;  %v1256_v49 = vpop.f32.mrf.mxu1 }
 0x1bb   :  { %1349 = vst [vmem:[#allocation8 + $0x230] sm:$0xff] %v1239_v45  ;;  %v1241_v48 = vadd.f32 %v1240_v34, %v923_v47 }
 0x1bc   :  { %v927_v50 = vpop.f32.mrf.mxu0  ;;  %v1258_v52 = vpop.f32.mrf.mxu1 }
 0x1bd   :  { %1350 = vst [vmem:[#allocation8 + $0x238] sm:$0xff] %v1241_v48  ;;  %v1245_v51 = vadd.f32 %v1244_v37, %v927_v50 }
 0x1be   :  { %v929_v53 = vpop.f32.mrf.mxu0  ;;  %v1262_v55 = vpop.f32.mrf.mxu1 }
 0x1bf   :  { %1351 = vst [vmem:[#allocation8 + $0x240] sm:$0xff] %v1245_v51  ;;  %v1247_v54 = vadd.f32 %v1246_v40, %v929_v53 }
 0x1c0   :  { %v933_v56 = vpop.f32.mrf.mxu0  ;;  %v1264_v59 = vpop.f32.mrf.mxu1 }
 0x1c1   :  { %1352 = vst [vmem:[#allocation8 + $0x248] sm:$0xff] %v1247_v54  ;;  %v1251_v57 = vadd.f32 %v1250_v43, %v933_v56 }
 0x1c2   :  { %v935_v58 = vpop.f32.mrf.mxu0  ;;  %v1268_v1 = vpop.f32.mrf.mxu1 }
 0x1c3   :  { %1353 = vst [vmem:[#allocation8 + $0x250] sm:$0xff] %v1251_v57  ;;  %v1253_v60 = vadd.f32 %v1252_v46, %v935_v58 }
 0x1c4   :  { %v939_v61 = vpop.f32.mrf.mxu0  ;;  %v1270_v6 = vpop.f32.mrf.mxu1 }
 0x1c5   :  { %1354 = vst [vmem:[#allocation8 + $0x258] sm:$0xff] %v1253_v60  ;;  %v1257_v62 = vadd.f32 %v1256_v49, %v939_v61 }
 0x1c6   :  { %v941_v63 = vpop.f32.mrf.mxu0  ;;  %v1274_v11 = vpop.f32.mrf.mxu1 }
 0x1c7   :  { %1355 = vst [vmem:[#allocation8 + $0x260] sm:$0xff] %v1257_v62  ;;  %v1259_v2 = vadd.f32 %v1258_v52, %v941_v63 }
 0x1c8   :  { %v945_v3 = vpop.f32.mrf.mxu0  ;;  %v1276_v15 = vpop.f32.mrf.mxu1 }
 0x1c9   :  { %1356 = vst [vmem:[#allocation8 + $0x268] sm:$0xff] %v1259_v2  ;;  %v1263_v4 = vadd.f32 %v1262_v55, %v945_v3 }
 0x1ca   :  { %v947_v5 = vpop.f32.mrf.mxu0 }
 0x1cb   :  { %1357 = vst [vmem:[#allocation8 + $0x270] sm:$0xff] %v1263_v4  ;;  %v1265_v7 = vadd.f32 %v1264_v59, %v947_v5 }
 0x1cc   :  { %v951_v8 = vpop.f32.mrf.mxu0 }
 0x1cd   :  { %1358 = vst [vmem:[#allocation8 + $0x278] sm:$0xff] %v1265_v7  ;;  %v1269_v9 = vadd.f32 %v1268_v1, %v951_v8 }
 0x1ce   :  { %v953_v10 = vpop.f32.mrf.mxu0 }
 0x1cf   :  { %1359 = vst [vmem:[#allocation8 + $0x280] sm:$0xff] %v1269_v9  ;;  %v1271_v12 = vadd.f32 %v1270_v6, %v953_v10 }
 0x1d0   :  { %v957_v13 = vpop.f32.mrf.mxu0 }
 0x1d1   :  { %1360 = vst [vmem:[#allocation8 + $0x288] sm:$0xff] %v1271_v12  ;;  %v1275_v14 = vadd.f32 %v1274_v11, %v957_v13 }
 0x1d2   :  { %v959_v16 = vpop.f32.mrf.mxu0 }
 0x1d3   :  { %1361 = vst [vmem:[#allocation8 + $0x290] sm:$0xff] %v1275_v14  ;;  %v1277_v17 = vadd.f32 %v1276_v15, %v959_v16 }
 0x1d5   :  { %1362 = vst [vmem:[#allocation8 + $0x298] sm:$0xff] %v1277_v17 }
 0x1d6   :  { %1503 = shalt.err (!%p1500_p5)
}
 0x1d7   :  { %1374 = dma.vmem_to_hbm [thread:$0]  %s1369_s2, 10752, %s1718_s3, [#allocation4], %s1520_s17, %s1520_s17, %s1521_s18  }
 0x1d8   :  { %1516 = dma.done.wait [#allocation4], 10752  }
 0x1d9   :  { %1517 = vsyncadd [#allocation4], 4294956544 }
 0x1da   :  { %1378 = vsyncpa [#allocation3], 1 }
 0x1db   :  { %1379 = vsyncpa [#allocation6], 1 }
 0x1dc   :  { %1380 = vsyncpa [#allocation4], 1 }

</bundles_post_ra>
